<compile_context>
chip_gen: v7x
topology: tpu7x:2x2x1
jax: 0.10.0
libtpu: 0.0.40
codegen_flags: <defaults>
</compile_context>

<pallas_src>
import jax
import jax.numpy as jnp
from jax import lax
from jax.experimental import pallas as pl
from jax.experimental.pallas import tpu as pltpu


# --------------------------------------------------------------------------
# Kernel: full 2-layer LSTM recurrence + deferred output Linear, all in VMEM.
# --------------------------------------------------------------------------
def _generator_kernel(x_ref, h0_ref, c0_ref,
                      wih0_ref, b0_ref,
                      whh0_ref, wih1_ref, whh1_ref, b1_ref,
                      wout_ref, bout_ref,
                      gscale_ref, goff_ref,
                      out_ref,
                      gx0_ref, h1_ref):
    TB = x_ref.shape[0]
    B = h0_ref.shape[1]
    H = h0_ref.shape[-1]
    T = TB // B

    # Tiny weights / per-lane vectors live in vregs for the whole kernel.
    whh0 = whh0_ref[...]          # (H, 4H)  bf16
    wih1 = wih1_ref[...]          # (H, 4H)  bf16
    whh1 = whh1_ref[...]          # (H, 4H)  bf16
    b1 = b1_ref[...]              # (1, 4H)  f32
    gscale = gscale_ref[...]      # (1, 4H)  0.5 on i/f/o lanes, 1.0 on g lanes
    goff = goff_ref[...]          # (1, 4H)  0.5 on i/f/o lanes, 0.0 on g lanes

    def lstm_cell(gates, c):
        # sigmoid(z) = 0.5*tanh(0.5 z) + 0.5 ;  tanh(z) = 1.0*tanh(1.0 z) + 0.0
        # One full-width tanh push covers all four gates -> 2 EUP pushes/cell.
        t = jnp.tanh(gates * gscale)
        act = t * gscale + goff
        i = act[:, 0 * H:1 * H]        # PyTorch gate order: i, f, g, o
        f = act[:, 1 * H:2 * H]
        g = act[:, 2 * H:3 * H]
        o = act[:, 3 * H:4 * H]
        c_new = f * c + i * g
        h_new = o * jnp.tanh(c_new)
        return h_new, c_new

    # ---- Pre-pass: one (T*B, F) @ (F, 4H) matmul, off the serial chain.
    gx0_ref[...] = (jnp.dot(x_ref[...], wih0_ref[...],
                            preferred_element_type=jnp.float32) + b0_ref[...])

    # ---- Serial recurrence: static Python unroll (T=8) -> static Ref slices.
    h_l0 = h0_ref[0]
    c_l0 = c0_ref[0]
    h_l1 = h0_ref[1]
    c_l1 = c0_ref[1]
    h_l0_bf = h_l0.astype(jnp.bfloat16)
    h_l1_bf = h_l1.astype(jnp.bfloat16)

    for t in range(T):
        rows = pl.ds(t * B, B)
        # Layer-1 recurrent term depends only on LAST step's h_l1: issued
        # first (+ bias) so its MXU latency hides under cell-0's EUP work.
        r1 = jnp.dot(h_l1_bf, whh1, preferred_element_type=jnp.float32) + b1
        # Layer 0: input part precomputed, only the recurrent matmul remains.
        gates0 = gx0_ref[rows, :] + jnp.dot(h_l0_bf, whh0,
                                            preferred_element_type=jnp.float32)
        h_l0, c_l0 = lstm_cell(gates0, c_l0)
        h_l0_bf = h_l0.astype(jnp.bfloat16)
        # Layer 1: only the K=32 input matmul sits on the chain.
        gates1 = r1 + jnp.dot(h_l0_bf, wih1, preferred_element_type=jnp.float32)
        h_l1, c_l1 = lstm_cell(gates1, c_l1)
        h_l1_bf = h_l1.astype(jnp.bfloat16)
        h1_ref[rows, :] = h_l1                     # defer the H -> 2 Linear

    # ---- Post-pass: single lane-dense (T*B, H) @ (H, 128) matmul + store.
    out_ref[...] = (jnp.dot(h1_ref[...], wout_ref[...],
                            preferred_element_type=jnp.float32) + bout_ref[...])


# --------------------------------------------------------------------------
# Wrapper (glue): layout conversion, weight packing + pallas_call.
# --------------------------------------------------------------------------
def generator_forward(x, hidden, params):
    """x: (B, T, F) float32, hidden = (h0, c0) each (L=2, B, H). Returns (B, T, 2)."""
    h0, c0 = hidden
    B, T, F = x.shape
    H = h0.shape[-1]
    OUT_PAD = 128                                   # lane-dense output width

    # time-major, flattened rows: row t*B + b  <->  (t, b)
    x2d = jnp.transpose(x, (1, 0, 2)).reshape(T * B, F)

    # PyTorch weights are (4H, in); kernel wants (in, 4H). Biases are summed.
    wih0 = params["weight_ih_l0"].T.astype(jnp.float32)            # (F, 4H), off-chain
    b0 = (params["bias_ih_l0"] + params["bias_hh_l0"]).reshape(1, 4 * H)
    whh0 = params["weight_hh_l0"].T.astype(jnp.bfloat16)           # (H, 4H)
    wih1 = params["weight_ih_l1"].T.astype(jnp.bfloat16)           # (H, 4H)
    whh1 = params["weight_hh_l1"].T.astype(jnp.bfloat16)           # (H, 4H)
    b1 = (params["bias_ih_l1"] + params["bias_hh_l1"]).reshape(1, 4 * H)

    # Output Linear zero-padded to 128 lanes -> dense stores in the kernel.
    wout = jnp.zeros((H, OUT_PAD), jnp.float32).at[:, :2].set(params["out_weight"].T)
    bout = jnp.zeros((1, OUT_PAD), jnp.float32).at[:, :2].set(
        params["out_bias"].reshape(1, 2))

    # Per-lane scale/offset turning one tanh into {sigmoid on i/f/o, tanh on g}.
    half = jnp.full((1, H), 0.5, jnp.float32)
    one = jnp.ones((1, H), jnp.float32)
    zero = jnp.zeros((1, H), jnp.float32)
    gscale = jnp.concatenate([half, half, one, half], axis=1)      # i f g o
    goff = jnp.concatenate([half, half, zero, half], axis=1)

    vmem = pl.BlockSpec(memory_space=pltpu.MemorySpace.VMEM)
    out2d = pl.pallas_call(
        _generator_kernel,
        out_shape=jax.ShapeDtypeStruct((T * B, OUT_PAD), jnp.float32),
        in_specs=[vmem] * 13,
        out_specs=vmem,
        scratch_shapes=[
            pltpu.VMEM((T * B, 4 * H), jnp.float32),   # x @ W_ih0 + b0 (all t)
            pltpu.VMEM((T * B, H), jnp.float32),       # collected layer-1 h
        ],
        compiler_params=pltpu.CompilerParams(vmem_limit_bytes=4 * 1024 * 1024),
    )(x2d, h0, c0, wih0, b0, whh0, wih1, whh1, b1, wout, bout, gscale, goff)

    return jnp.transpose(out2d[:, :2].reshape(T, B, 2), (1, 0, 2))   # (B, T, 2)


# --------------------------------------------------------------------------
# Pure-JAX reference (same math as PyTorch) for a correctness sanity check.
# --------------------------------------------------------------------------
def generator_reference(x, hidden, params):
    h0, c0 = hidden
    H = h0.shape[-1]

    def sigmoid(z):
        return 1.0 / (1.0 + jnp.exp(-z))

    def cell(x_t, h, c, wih, whh, b):
        gates = x_t @ wih.T + h @ whh.T + b
        i = sigmoid(gates[:, 0 * H:1 * H])
        f = sigmoid(gates[:, 1 * H:2 * H])
        g = jnp.tanh(gates[:, 2 * H:3 * H])
        o = sigmoid(gates[:, 3 * H:4 * H])
        c_new = f * c + i * g
        return o * jnp.tanh(c_new), c_new

    b0 = params["bias_ih_l0"] + params["bias_hh_l0"]
    b1 = params["bias_ih_l1"] + params["bias_hh_l1"]

    def step(carry, x_t):
        h_l0, c_l0, h_l1, c_l1 = carry
        h_l0, c_l0 = cell(x_t, h_l0, c_l0,
                          params["weight_ih_l0"], params["weight_hh_l0"], b0)
        h_l1, c_l1 = cell(h_l0, h_l1, c_l1,
                          params["weight_ih_l1"], params["weight_hh_l1"], b1)
        y_t = h_l1 @ params["out_weight"].T + params["out_bias"]
        return (h_l0, c_l0, h_l1, c_l1), y_t

    x_tm = jnp.transpose(x, (1, 0, 2))
    (_, _, _, _), ys = lax.scan(step, (h0[0], c0[0], h0[1], c0[1]), x_tm)
    return jnp.transpose(ys, (1, 0, 2))


# --------------------------------------------------------------------------
if __name__ == "__main__":
    # Small shapes consistent with the module (num_layers fixed at 2).
    SEQ_LEN, BATCH, N_FEATURES, HIDDEN, NUM_LAYERS = 8, 2, 2, 32, 2

    key = jax.random.PRNGKey(0)
    keys = jax.random.split(key, 12)
    scale = 0.1
    params = {
        "weight_ih_l0": scale * jax.random.normal(keys[0], (4 * HIDDEN, N_FEATURES), jnp.float32),
        "weight_hh_l0": scale * jax.random.normal(keys[1], (4 * HIDDEN, HIDDEN), jnp.float32),
        "bias_ih_l0":   scale * jax.random.normal(keys[2], (4 * HIDDEN,), jnp.float32),
        "bias_hh_l0":   scale * jax.random.normal(keys[3], (4 * HIDDEN,), jnp.float32),
        "weight_ih_l1": scale * jax.random.normal(keys[4], (4 * HIDDEN, HIDDEN), jnp.float32),
        "weight_hh_l1": scale * jax.random.normal(keys[5], (4 * HIDDEN, HIDDEN), jnp.float32),
        "bias_ih_l1":   scale * jax.random.normal(keys[6], (4 * HIDDEN,), jnp.float32),
        "bias_hh_l1":   scale * jax.random.normal(keys[7], (4 * HIDDEN,), jnp.float32),
        "out_weight":   scale * jax.random.normal(keys[8], (2, HIDDEN), jnp.float32),
        "out_bias":     scale * jax.random.normal(keys[9], (2,), jnp.float32),
    }

    x = jax.random.normal(keys[10], (BATCH, SEQ_LEN, N_FEATURES), jnp.float32)
    # init_hidden(): zeros of shape (num_layers, batch, hidden)
    h0 = jnp.zeros((NUM_LAYERS, BATCH, HIDDEN), jnp.float32)
    c0 = jnp.zeros((NUM_LAYERS, BATCH, HIDDEN), jnp.float32)

    out = generator_forward(x, (h0, c0), params)
    out = jax.block_until_ready(out)

    ref = generator_reference(x, (h0, c0), params)
    assert out.shape == (BATCH, SEQ_LEN, 2), out.shape
    assert jnp.allclose(out, ref, rtol=1e-2, atol=1e-2), "mismatch vs reference"

    print("KERNEL_OK")
</pallas_src>

<mosaic_0001>
module attributes {stable_mosaic.version = 11 : i64} {
  func.func @_generator_kernel(%arg0: memref<16x2xf32, #tpu.memory_space<vmem>>, %arg1: memref<2x2x32xf32, #tpu.memory_space<vmem>>, %arg2: memref<2x2x32xf32, #tpu.memory_space<vmem>>, %arg3: memref<2x128xf32, #tpu.memory_space<vmem>>, %arg4: memref<1x128xf32, #tpu.memory_space<vmem>>, %arg5: memref<32x128xbf16, #tpu.memory_space<vmem>>, %arg6: memref<32x128xbf16, #tpu.memory_space<vmem>>, %arg7: memref<32x128xbf16, #tpu.memory_space<vmem>>, %arg8: memref<1x128xf32, #tpu.memory_space<vmem>>, %arg9: memref<32x128xf32, #tpu.memory_space<vmem>>, %arg10: memref<1x128xf32, #tpu.memory_space<vmem>>, %arg11: memref<1x128xf32, #tpu.memory_space<vmem>>, %arg12: memref<1x128xf32, #tpu.memory_space<vmem>>, %arg13: memref<16x128xf32, #tpu.memory_space<vmem>>, %arg14: memref<16x128xf32, #tpu.memory_space<vmem>>, %arg15: memref<16x32xf32, #tpu.memory_space<vmem>>) attributes {dimension_semantics = [], scalar_prefetch = 0 : i64, scratch_operands = 2 : i64, tpu.core_type = #tpu.core_type<tc>} {
    %c0 = arith.constant 0 : index
    %c0_0 = arith.constant 0 : index
    %0 = vector.load %arg5[%c0, %c0_0] : memref<32x128xbf16, #tpu.memory_space<vmem>>, vector<32x128xbf16>
    %c0_1 = arith.constant 0 : index
    %c0_2 = arith.constant 0 : index
    %1 = vector.load %arg6[%c0_1, %c0_2] : memref<32x128xbf16, #tpu.memory_space<vmem>>, vector<32x128xbf16>
    %c0_3 = arith.constant 0 : index
    %c0_4 = arith.constant 0 : index
    %2 = vector.load %arg7[%c0_3, %c0_4] : memref<32x128xbf16, #tpu.memory_space<vmem>>, vector<32x128xbf16>
    %c0_5 = arith.constant 0 : index
    %c0_6 = arith.constant 0 : index
    %3 = vector.load %arg8[%c0_5, %c0_6] : memref<1x128xf32, #tpu.memory_space<vmem>>, vector<1x128xf32>
    %c0_7 = arith.constant 0 : index
    %c0_8 = arith.constant 0 : index
    %4 = vector.load %arg11[%c0_7, %c0_8] : memref<1x128xf32, #tpu.memory_space<vmem>>, vector<1x128xf32>
    %c0_9 = arith.constant 0 : index
    %c0_10 = arith.constant 0 : index
    %5 = vector.load %arg12[%c0_9, %c0_10] : memref<1x128xf32, #tpu.memory_space<vmem>>, vector<1x128xf32>
    %c0_11 = arith.constant 0 : index
    %c0_12 = arith.constant 0 : index
    %6 = vector.load %arg0[%c0_11, %c0_12] : memref<16x2xf32, #tpu.memory_space<vmem>>, vector<16x2xf32>
    %c0_13 = arith.constant 0 : index
    %c0_14 = arith.constant 0 : index
    %7 = vector.load %arg3[%c0_13, %c0_14] : memref<2x128xf32, #tpu.memory_space<vmem>>, vector<2x128xf32>
    %cst = arith.constant dense<0.000000e+00> : vector<16x128xf32>
    %8 = tpu.matmul %6, %7, %cst {dimension_numbers = #tpu.dot_dimension_numbers<[1], [0], [0], [1], [0, 0, 1, 1], [], []>} : vector<16x2xf32>, vector<2x128xf32>, vector<16x128xf32> -> vector<16x128xf32>
    %c0_15 = arith.constant 0 : index
    %c0_16 = arith.constant 0 : index
    %9 = vector.load %arg4[%c0_15, %c0_16] : memref<1x128xf32, #tpu.memory_space<vmem>>, vector<1x128xf32>
    %10 = vector.broadcast %9 : vector<1x128xf32> to vector<16x128xf32>
    %11 = arith.addf %8, %10 : vector<16x128xf32>
    %c0_17 = arith.constant 0 : index
    %c0_18 = arith.constant 0 : index
    %12 = vector.load %arg14[%c0_17, %c0_18] : memref<16x128xf32, #tpu.memory_space<vmem>>, vector<16x128xf32>
    tpu.vector_store %arg14[%c0_17, %c0_18], %11 {strides = array<i32>} : memref<16x128xf32, #tpu.memory_space<vmem>>, vector<16x128xf32>,
    %c0_19 = arith.constant 0 : index
    %c0_20 = arith.constant 0 : index
    %c0_21 = arith.constant 0 : index
    %13 = vector.load %arg1[%c0_19, %c0_20, %c0_21] : memref<2x2x32xf32, #tpu.memory_space<vmem>>, vector<1x2x32xf32>
    %14 = vector.shape_cast %13 : vector<1x2x32xf32> to vector<2x32xf32>
    %c0_22 = arith.constant 0 : index
    %c0_23 = arith.constant 0 : index
    %c0_24 = arith.constant 0 : index
    %15 = vector.load %arg2[%c0_22, %c0_23, %c0_24] : memref<2x2x32xf32, #tpu.memory_space<vmem>>, vector<1x2x32xf32>
    %16 = vector.shape_cast %15 : vector<1x2x32xf32> to vector<2x32xf32>
    %c1 = arith.constant 1 : index
    %c0_25 = arith.constant 0 : index
    %c0_26 = arith.constant 0 : index
    %17 = vector.load %arg1[%c1, %c0_25, %c0_26] : memref<2x2x32xf32, #tpu.memory_space<vmem>>, vector<1x2x32xf32>
    %18 = vector.shape_cast %17 : vector<1x2x32xf32> to vector<2x32xf32>
    %c1_27 = arith.constant 1 : index
    %c0_28 = arith.constant 0 : index
    %c0_29 = arith.constant 0 : index
    %19 = vector.load %arg2[%c1_27, %c0_28, %c0_29] : memref<2x2x32xf32, #tpu.memory_space<vmem>>, vector<1x2x32xf32>
    %20 = vector.shape_cast %19 : vector<1x2x32xf32> to vector<2x32xf32>
    %21 = arith.truncf %14 : vector<2x32xf32> to vector<2x32xbf16>
    %22 = arith.truncf %18 : vector<2x32xf32> to vector<2x32xbf16>
    %cst_30 = arith.constant dense<0.000000e+00> : vector<2x128xf32>
    %23 = tpu.matmul %22, %2, %cst_30 {dimension_numbers = #tpu.dot_dimension_numbers<[1], [0], [0], [1], [0, 0, 1, 1], [], []>} : vector<2x32xbf16>, vector<32x128xbf16>, vector<2x128xf32> -> vector<2x128xf32>
    %24 = vector.broadcast %3 : vector<1x128xf32> to vector<2x128xf32>
    %25 = arith.addf %23, %24 : vector<2x128xf32>
    %c0_31 = arith.constant 0 : index
    %c0_32 = arith.constant 0 : index
    %26 = vector.load %arg14[%c0_31, %c0_32] : memref<16x128xf32, #tpu.memory_space<vmem>>, vector<2x128xf32>
    %cst_33 = arith.constant dense<0.000000e+00> : vector<2x128xf32>
    %27 = tpu.matmul %21, %0, %cst_33 {dimension_numbers = #tpu.dot_dimension_numbers<[1], [0], [0], [1], [0, 0, 1, 1], [], []>} : vector<2x32xbf16>, vector<32x128xbf16>, vector<2x128xf32> -> vector<2x128xf32>
    %28 = arith.addf %26, %27 : vector<2x128xf32>
    %29 = vector.broadcast %4 : vector<1x128xf32> to vector<2x128xf32>
    %30 = arith.mulf %28, %29 : vector<2x128xf32>
    %31 = math.tanh %30 : vector<2x128xf32>
    %32 = vector.broadcast %4 : vector<1x128xf32> to vector<2x128xf32>
    %33 = arith.mulf %31, %32 : vector<2x128xf32>
    %34 = vector.broadcast %5 : vector<1x128xf32> to vector<2x128xf32>
    %35 = arith.addf %33, %34 : vector<2x128xf32>
    %36 = vector.extract_strided_slice %35 {offsets = [0, 0], sizes = [2, 32], strides = [1, 1]} : vector<2x128xf32> to vector<2x32xf32>
    %37 = vector.extract_strided_slice %35 {offsets = [0, 32], sizes = [2, 32], strides = [1, 1]} : vector<2x128xf32> to vector<2x32xf32>
    %38 = vector.extract_strided_slice %35 {offsets = [0, 64], sizes = [2, 32], strides = [1, 1]} : vector<2x128xf32> to vector<2x32xf32>
    %39 = vector.extract_strided_slice %35 {offsets = [0, 96], sizes = [2, 32], strides = [1, 1]} : vector<2x128xf32> to vector<2x32xf32>
    %40 = arith.mulf %37, %16 : vector<2x32xf32>
    %41 = arith.mulf %36, %38 : vector<2x32xf32>
    %42 = arith.addf %40, %41 : vector<2x32xf32>
    %43 = math.tanh %42 : vector<2x32xf32>
    %44 = arith.mulf %39, %43 : vector<2x32xf32>
    %45 = arith.truncf %44 : vector<2x32xf32> to vector<2x32xbf16>
    %cst_34 = arith.constant dense<0.000000e+00> : vector<2x128xf32>
    %46 = tpu.matmul %45, %1, %cst_34 {dimension_numbers = #tpu.dot_dimension_numbers<[1], [0], [0], [1], [0, 0, 1, 1], [], []>} : vector<2x32xbf16>, vector<32x128xbf16>, vector<2x128xf32> -> vector<2x128xf32>
    %47 = arith.addf %25, %46 : vector<2x128xf32>
    %48 = vector.broadcast %4 : vector<1x128xf32> to vector<2x128xf32>
    %49 = arith.mulf %47, %48 : vector<2x128xf32>
    %50 = math.tanh %49 : vector<2x128xf32>
    %51 = vector.broadcast %4 : vector<1x128xf32> to vector<2x128xf32>
    %52 = arith.mulf %50, %51 : vector<2x128xf32>
    %53 = vector.broadcast %5 : vector<1x128xf32> to vector<2x128xf32>
    %54 = arith.addf %52, %53 : vector<2x128xf32>
    %55 = vector.extract_strided_slice %54 {offsets = [0, 0], sizes = [2, 32], strides = [1, 1]} : vector<2x128xf32> to vector<2x32xf32>
    %56 = vector.extract_strided_slice %54 {offsets = [0, 32], sizes = [2, 32], strides = [1, 1]} : vector<2x128xf32> to vector<2x32xf32>
    %57 = vector.extract_strided_slice %54 {offsets = [0, 64], sizes = [2, 32], strides = [1, 1]} : vector<2x128xf32> to vector<2x32xf32>
    %58 = vector.extract_strided_slice %54 {offsets = [0, 96], sizes = [2, 32], strides = [1, 1]} : vector<2x128xf32> to vector<2x32xf32>
    %59 = arith.mulf %56, %20 : vector<2x32xf32>
    %60 = arith.mulf %55, %57 : vector<2x32xf32>
    %61 = arith.addf %59, %60 : vector<2x32xf32>
    %62 = math.tanh %61 : vector<2x32xf32>
    %63 = arith.mulf %58, %62 : vector<2x32xf32>
    %64 = arith.truncf %63 : vector<2x32xf32> to vector<2x32xbf16>
    %c0_35 = arith.constant 0 : index
    %c0_36 = arith.constant 0 : index
    %65 = vector.load %arg15[%c0_35, %c0_36] : memref<16x32xf32, #tpu.memory_space<vmem>>, vector<2x32xf32>
    tpu.vector_store %arg15[%c0_35, %c0_36], %63 {strides = array<i32>} : memref<16x32xf32, #tpu.memory_space<vmem>>, vector<2x32xf32>,
    %cst_37 = arith.constant dense<0.000000e+00> : vector<2x128xf32>
    %66 = tpu.matmul %64, %2, %cst_37 {dimension_numbers = #tpu.dot_dimension_numbers<[1], [0], [0], [1], [0, 0, 1, 1], [], []>} : vector<2x32xbf16>, vector<32x128xbf16>, vector<2x128xf32> -> vector<2x128xf32>
    %67 = vector.broadcast %3 : vector<1x128xf32> to vector<2x128xf32>
    %68 = arith.addf %66, %67 : vector<2x128xf32>
    %c2 = arith.constant 2 : index
    %c0_38 = arith.constant 0 : index
    %69 = vector.load %arg14[%c2, %c0_38] : memref<16x128xf32, #tpu.memory_space<vmem>>, vector<2x128xf32>
    %cst_39 = arith.constant dense<0.000000e+00> : vector<2x128xf32>
    %70 = tpu.matmul %45, %0, %cst_39 {dimension_numbers = #tpu.dot_dimension_numbers<[1], [0], [0], [1], [0, 0, 1, 1], [], []>} : vector<2x32xbf16>, vector<32x128xbf16>, vector<2x128xf32> -> vector<2x128xf32>
    %71 = arith.addf %69, %70 : vector<2x128xf32>
    %72 = vector.broadcast %4 : vector<1x128xf32> to vector<2x128xf32>
    %73 = arith.mulf %71, %72 : vector<2x128xf32>
    %74 = math.tanh %73 : vector<2x128xf32>
    %75 = vector.broadcast %4 : vector<1x128xf32> to vector<2x128xf32>
    %76 = arith.mulf %74, %75 : vector<2x128xf32>
    %77 = vector.broadcast %5 : vector<1x128xf32> to vector<2x128xf32>
    %78 = arith.addf %76, %77 : vector<2x128xf32>
    %79 = vector.extract_strided_slice %78 {offsets = [0, 0], sizes = [2, 32], strides = [1, 1]} : vector<2x128xf32> to vector<2x32xf32>
    %80 = vector.extract_strided_slice %78 {offsets = [0, 32], sizes = [2, 32], strides = [1, 1]} : vector<2x128xf32> to vector<2x32xf32>
    %81 = vector.extract_strided_slice %78 {offsets = [0, 64], sizes = [2, 32], strides = [1, 1]} : vector<2x128xf32> to vector<2x32xf32>
    %82 = vector.extract_strided_slice %78 {offsets = [0, 96], sizes = [2, 32], strides = [1, 1]} : vector<2x128xf32> to vector<2x32xf32>
    %83 = arith.mulf %80, %42 : vector<2x32xf32>
    %84 = arith.mulf %79, %81 : vector<2x32xf32>
    %85 = arith.addf %83, %84 : vector<2x32xf32>
    %86 = math.tanh %85 : vector<2x32xf32>
    %87 = arith.mulf %82, %86 : vector<2x32xf32>
    %88 = arith.truncf %87 : vector<2x32xf32> to vector<2x32xbf16>
    %cst_40 = arith.constant dense<0.000000e+00> : vector<2x128xf32>
    %89 = tpu.matmul %88, %1, %cst_40 {dimension_numbers = #tpu.dot_dimension_numbers<[1], [0], [0], [1], [0, 0, 1, 1], [], []>} : vector<2x32xbf16>, vector<32x128xbf16>, vector<2x128xf32> -> vector<2x128xf32>
    %90 = arith.addf %68, %89 : vector<2x128xf32>
    %91 = vector.broadcast %4 : vector<1x128xf32> to vector<2x128xf32>
    %92 = arith.mulf %90, %91 : vector<2x128xf32>
    %93 = math.tanh %92 : vector<2x128xf32>
    %94 = vector.broadcast %4 : vector<1x128xf32> to vector<2x128xf32>
    %95 = arith.mulf %93, %94 : vector<2x128xf32>
    %96 = vector.broadcast %5 : vector<1x128xf32> to vector<2x128xf32>
    %97 = arith.addf %95, %96 : vector<2x128xf32>
    %98 = vector.extract_strided_slice %97 {offsets = [0, 0], sizes = [2, 32], strides = [1, 1]} : vector<2x128xf32> to vector<2x32xf32>
    %99 = vector.extract_strided_slice %97 {offsets = [0, 32], sizes = [2, 32], strides = [1, 1]} : vector<2x128xf32> to vector<2x32xf32>
    %100 = vector.extract_strided_slice %97 {offsets = [0, 64], sizes = [2, 32], strides = [1, 1]} : vector<2x128xf32> to vector<2x32xf32>
    %101 = vector.extract_strided_slice %97 {offsets = [0, 96], sizes = [2, 32], strides = [1, 1]} : vector<2x128xf32> to vector<2x32xf32>
    %102 = arith.mulf %99, %61 : vector<2x32xf32>
    %103 = arith.mulf %98, %100 : vector<2x32xf32>
    %104 = arith.addf %102, %103 : vector<2x32xf32>
    %105 = math.tanh %104 : vector<2x32xf32>
    %106 = arith.mulf %101, %105 : vector<2x32xf32>
    %107 = arith.truncf %106 : vector<2x32xf32> to vector<2x32xbf16>
    %c2_41 = arith.constant 2 : index
    %c0_42 = arith.constant 0 : index
    %108 = vector.load %arg15[%c2_41, %c0_42] : memref<16x32xf32, #tpu.memory_space<vmem>>, vector<2x32xf32>
    tpu.vector_store %arg15[%c2_41, %c0_42], %106 {strides = array<i32>} : memref<16x32xf32, #tpu.memory_space<vmem>>, vector<2x32xf32>,
    %cst_43 = arith.constant dense<0.000000e+00> : vector<2x128xf32>
    %109 = tpu.matmul %107, %2, %cst_43 {dimension_numbers = #tpu.dot_dimension_numbers<[1], [0], [0], [1], [0, 0, 1, 1], [], []>} : vector<2x32xbf16>, vector<32x128xbf16>, vector<2x128xf32> -> vector<2x128xf32>
    %110 = vector.broadcast %3 : vector<1x128xf32> to vector<2x128xf32>
    %111 = arith.addf %109, %110 : vector<2x128xf32>
    %c4 = arith.constant 4 : index
    %c0_44 = arith.constant 0 : index
    %112 = vector.load %arg14[%c4, %c0_44] : memref<16x128xf32, #tpu.memory_space<vmem>>, vector<2x128xf32>
    %cst_45 = arith.constant dense<0.000000e+00> : vector<2x128xf32>
    %113 = tpu.matmul %88, %0, %cst_45 {dimension_numbers = #tpu.dot_dimension_numbers<[1], [0], [0], [1], [0, 0, 1, 1], [], []>} : vector<2x32xbf16>, vector<32x128xbf16>, vector<2x128xf32> -> vector<2x128xf32>
    %114 = arith.addf %112, %113 : vector<2x128xf32>
    %115 = vector.broadcast %4 : vector<1x128xf32> to vector<2x128xf32>
    %116 = arith.mulf %114, %115 : vector<2x128xf32>
    %117 = math.tanh %116 : vector<2x128xf32>
    %118 = vector.broadcast %4 : vector<1x128xf32> to vector<2x128xf32>
    %119 = arith.mulf %117, %118 : vector<2x128xf32>
    %120 = vector.broadcast %5 : vector<1x128xf32> to vector<2x128xf32>
    %121 = arith.addf %119, %120 : vector<2x128xf32>
    %122 = vector.extract_strided_slice %121 {offsets = [0, 0], sizes = [2, 32], strides = [1, 1]} : vector<2x128xf32> to vector<2x32xf32>
    %123 = vector.extract_strided_slice %121 {offsets = [0, 32], sizes = [2, 32], strides = [1, 1]} : vector<2x128xf32> to vector<2x32xf32>
    %124 = vector.extract_strided_slice %121 {offsets = [0, 64], sizes = [2, 32], strides = [1, 1]} : vector<2x128xf32> to vector<2x32xf32>
    %125 = vector.extract_strided_slice %121 {offsets = [0, 96], sizes = [2, 32], strides = [1, 1]} : vector<2x128xf32> to vector<2x32xf32>
    %126 = arith.mulf %123, %85 : vector<2x32xf32>
    %127 = arith.mulf %122, %124 : vector<2x32xf32>
    %128 = arith.addf %126, %127 : vector<2x32xf32>
    %129 = math.tanh %128 : vector<2x32xf32>
    %130 = arith.mulf %125, %129 : vector<2x32xf32>
    %131 = arith.truncf %130 : vector<2x32xf32> to vector<2x32xbf16>
    %cst_46 = arith.constant dense<0.000000e+00> : vector<2x128xf32>
    %132 = tpu.matmul %131, %1, %cst_46 {dimension_numbers = #tpu.dot_dimension_numbers<[1], [0], [0], [1], [0, 0, 1, 1], [], []>} : vector<2x32xbf16>, vector<32x128xbf16>, vector<2x128xf32> -> vector<2x128xf32>
    %133 = arith.addf %111, %132 : vector<2x128xf32>
    %134 = vector.broadcast %4 : vector<1x128xf32> to vector<2x128xf32>
    %135 = arith.mulf %133, %134 : vector<2x128xf32>
    %136 = math.tanh %135 : vector<2x128xf32>
    %137 = vector.broadcast %4 : vector<1x128xf32> to vector<2x128xf32>
    %138 = arith.mulf %136, %137 : vector<2x128xf32>
    %139 = vector.broadcast %5 : vector<1x128xf32> to vector<2x128xf32>
    %140 = arith.addf %138, %139 : vector<2x128xf32>
    %141 = vector.extract_strided_slice %140 {offsets = [0, 0], sizes = [2, 32], strides = [1, 1]} : vector<2x128xf32> to vector<2x32xf32>
    %142 = vector.extract_strided_slice %140 {offsets = [0, 32], sizes = [2, 32], strides = [1, 1]} : vector<2x128xf32> to vector<2x32xf32>
    %143 = vector.extract_strided_slice %140 {offsets = [0, 64], sizes = [2, 32], strides = [1, 1]} : vector<2x128xf32> to vector<2x32xf32>
    %144 = vector.extract_strided_slice %140 {offsets = [0, 96], sizes = [2, 32], strides = [1, 1]} : vector<2x128xf32> to vector<2x32xf32>
    %145 = arith.mulf %142, %104 : vector<2x32xf32>
    %146 = arith.mulf %141, %143 : vector<2x32xf32>
    %147 = arith.addf %145, %146 : vector<2x32xf32>
    %148 = math.tanh %147 : vector<2x32xf32>
    %149 = arith.mulf %144, %148 : vector<2x32xf32>
    %150 = arith.truncf %149 : vector<2x32xf32> to vector<2x32xbf16>
    %c4_47 = arith.constant 4 : index
    %c0_48 = arith.constant 0 : index
    %151 = vector.load %arg15[%c4_47, %c0_48] : memref<16x32xf32, #tpu.memory_space<vmem>>, vector<2x32xf32>
    tpu.vector_store %arg15[%c4_47, %c0_48], %149 {strides = array<i32>} : memref<16x32xf32, #tpu.memory_space<vmem>>, vector<2x32xf32>,
    %cst_49 = arith.constant dense<0.000000e+00> : vector<2x128xf32>
    %152 = tpu.matmul %150, %2, %cst_49 {dimension_numbers = #tpu.dot_dimension_numbers<[1], [0], [0], [1], [0, 0, 1, 1], [], []>} : vector<2x32xbf16>, vector<32x128xbf16>, vector<2x128xf32> -> vector<2x128xf32>
    %153 = vector.broadcast %3 : vector<1x128xf32> to vector<2x128xf32>
    %154 = arith.addf %152, %153 : vector<2x128xf32>
    %c6 = arith.constant 6 : index
    %c0_50 = arith.constant 0 : index
    %155 = vector.load %arg14[%c6, %c0_50] : memref<16x128xf32, #tpu.memory_space<vmem>>, vector<2x128xf32>
    %cst_51 = arith.constant dense<0.000000e+00> : vector<2x128xf32>
    %156 = tpu.matmul %131, %0, %cst_51 {dimension_numbers = #tpu.dot_dimension_numbers<[1], [0], [0], [1], [0, 0, 1, 1], [], []>} : vector<2x32xbf16>, vector<32x128xbf16>, vector<2x128xf32> -> vector<2x128xf32>
    %157 = arith.addf %155, %156 : vector<2x128xf32>
    %158 = vector.broadcast %4 : vector<1x128xf32> to vector<2x128xf32>
    %159 = arith.mulf %157, %158 : vector<2x128xf32>
    %160 = math.tanh %159 : vector<2x128xf32>
    %161 = vector.broadcast %4 : vector<1x128xf32> to vector<2x128xf32>
    %162 = arith.mulf %160, %161 : vector<2x128xf32>
    %163 = vector.broadcast %5 : vector<1x128xf32> to vector<2x128xf32>
    %164 = arith.addf %162, %163 : vector<2x128xf32>
    %165 = vector.extract_strided_slice %164 {offsets = [0, 0], sizes = [2, 32], strides = [1, 1]} : vector<2x128xf32> to vector<2x32xf32>
    %166 = vector.extract_strided_slice %164 {offsets = [0, 32], sizes = [2, 32], strides = [1, 1]} : vector<2x128xf32> to vector<2x32xf32>
    %167 = vector.extract_strided_slice %164 {offsets = [0, 64], sizes = [2, 32], strides = [1, 1]} : vector<2x128xf32> to vector<2x32xf32>
    %168 = vector.extract_strided_slice %164 {offsets = [0, 96], sizes = [2, 32], strides = [1, 1]} : vector<2x128xf32> to vector<2x32xf32>
    %169 = arith.mulf %166, %128 : vector<2x32xf32>
    %170 = arith.mulf %165, %167 : vector<2x32xf32>
    %171 = arith.addf %169, %170 : vector<2x32xf32>
    %172 = math.tanh %171 : vector<2x32xf32>
    %173 = arith.mulf %168, %172 : vector<2x32xf32>
    %174 = arith.truncf %173 : vector<2x32xf32> to vector<2x32xbf16>
    %cst_52 = arith.constant dense<0.000000e+00> : vector<2x128xf32>
    %175 = tpu.matmul %174, %1, %cst_52 {dimension_numbers = #tpu.dot_dimension_numbers<[1], [0], [0], [1], [0, 0, 1, 1], [], []>} : vector<2x32xbf16>, vector<32x128xbf16>, vector<2x128xf32> -> vector<2x128xf32>
    %176 = arith.addf %154, %175 : vector<2x128xf32>
    %177 = vector.broadcast %4 : vector<1x128xf32> to vector<2x128xf32>
    %178 = arith.mulf %176, %177 : vector<2x128xf32>
    %179 = math.tanh %178 : vector<2x128xf32>
    %180 = vector.broadcast %4 : vector<1x128xf32> to vector<2x128xf32>
    %181 = arith.mulf %179, %180 : vector<2x128xf32>
    %182 = vector.broadcast %5 : vector<1x128xf32> to vector<2x128xf32>
    %183 = arith.addf %181, %182 : vector<2x128xf32>
    %184 = vector.extract_strided_slice %183 {offsets = [0, 0], sizes = [2, 32], strides = [1, 1]} : vector<2x128xf32> to vector<2x32xf32>
    %185 = vector.extract_strided_slice %183 {offsets = [0, 32], sizes = [2, 32], strides = [1, 1]} : vector<2x128xf32> to vector<2x32xf32>
    %186 = vector.extract_strided_slice %183 {offsets = [0, 64], sizes = [2, 32], strides = [1, 1]} : vector<2x128xf32> to vector<2x32xf32>
    %187 = vector.extract_strided_slice %183 {offsets = [0, 96], sizes = [2, 32], strides = [1, 1]} : vector<2x128xf32> to vector<2x32xf32>
    %188 = arith.mulf %185, %147 : vector<2x32xf32>
    %189 = arith.mulf %184, %186 : vector<2x32xf32>
    %190 = arith.addf %188, %189 : vector<2x32xf32>
    %191 = math.tanh %190 : vector<2x32xf32>
    %192 = arith.mulf %187, %191 : vector<2x32xf32>
    %193 = arith.truncf %192 : vector<2x32xf32> to vector<2x32xbf16>
    %c6_53 = arith.constant 6 : index
    %c0_54 = arith.constant 0 : index
    %194 = vector.load %arg15[%c6_53, %c0_54] : memref<16x32xf32, #tpu.memory_space<vmem>>, vector<2x32xf32>
    tpu.vector_store %arg15[%c6_53, %c0_54], %192 {strides = array<i32>} : memref<16x32xf32, #tpu.memory_space<vmem>>, vector<2x32xf32>,
    %cst_55 = arith.constant dense<0.000000e+00> : vector<2x128xf32>
    %195 = tpu.matmul %193, %2, %cst_55 {dimension_numbers = #tpu.dot_dimension_numbers<[1], [0], [0], [1], [0, 0, 1, 1], [], []>} : vector<2x32xbf16>, vector<32x128xbf16>, vector<2x128xf32> -> vector<2x128xf32>
    %196 = vector.broadcast %3 : vector<1x128xf32> to vector<2x128xf32>
    %197 = arith.addf %195, %196 : vector<2x128xf32>
    %c8 = arith.constant 8 : index
    %c0_56 = arith.constant 0 : index
    %198 = vector.load %arg14[%c8, %c0_56] : memref<16x128xf32, #tpu.memory_space<vmem>>, vector<2x128xf32>
    %cst_57 = arith.constant dense<0.000000e+00> : vector<2x128xf32>
    %199 = tpu.matmul %174, %0, %cst_57 {dimension_numbers = #tpu.dot_dimension_numbers<[1], [0], [0], [1], [0, 0, 1, 1], [], []>} : vector<2x32xbf16>, vector<32x128xbf16>, vector<2x128xf32> -> vector<2x128xf32>
    %200 = arith.addf %198, %199 : vector<2x128xf32>
    %201 = vector.broadcast %4 : vector<1x128xf32> to vector<2x128xf32>
    %202 = arith.mulf %200, %201 : vector<2x128xf32>
    %203 = math.tanh %202 : vector<2x128xf32>
    %204 = vector.broadcast %4 : vector<1x128xf32> to vector<2x128xf32>
    %205 = arith.mulf %203, %204 : vector<2x128xf32>
    %206 = vector.broadcast %5 : vector<1x128xf32> to vector<2x128xf32>
    %207 = arith.addf %205, %206 : vector<2x128xf32>
    %208 = vector.extract_strided_slice %207 {offsets = [0, 0], sizes = [2, 32], strides = [1, 1]} : vector<2x128xf32> to vector<2x32xf32>
    %209 = vector.extract_strided_slice %207 {offsets = [0, 32], sizes = [2, 32], strides = [1, 1]} : vector<2x128xf32> to vector<2x32xf32>
    %210 = vector.extract_strided_slice %207 {offsets = [0, 64], sizes = [2, 32], strides = [1, 1]} : vector<2x128xf32> to vector<2x32xf32>
    %211 = vector.extract_strided_slice %207 {offsets = [0, 96], sizes = [2, 32], strides = [1, 1]} : vector<2x128xf32> to vector<2x32xf32>
    %212 = arith.mulf %209, %171 : vector<2x32xf32>
    %213 = arith.mulf %208, %210 : vector<2x32xf32>
    %214 = arith.addf %212, %213 : vector<2x32xf32>
    %215 = math.tanh %214 : vector<2x32xf32>
    %216 = arith.mulf %211, %215 : vector<2x32xf32>
    %217 = arith.truncf %216 : vector<2x32xf32> to vector<2x32xbf16>
    %cst_58 = arith.constant dense<0.000000e+00> : vector<2x128xf32>
    %218 = tpu.matmul %217, %1, %cst_58 {dimension_numbers = #tpu.dot_dimension_numbers<[1], [0], [0], [1], [0, 0, 1, 1], [], []>} : vector<2x32xbf16>, vector<32x128xbf16>, vector<2x128xf32> -> vector<2x128xf32>
    %219 = arith.addf %197, %218 : vector<2x128xf32>
    %220 = vector.broadcast %4 : vector<1x128xf32> to vector<2x128xf32>
    %221 = arith.mulf %219, %220 : vector<2x128xf32>
    %222 = math.tanh %221 : vector<2x128xf32>
    %223 = vector.broadcast %4 : vector<1x128xf32> to vector<2x128xf32>
    %224 = arith.mulf %222, %223 : vector<2x128xf32>
    %225 = vector.broadcast %5 : vector<1x128xf32> to vector<2x128xf32>
    %226 = arith.addf %224, %225 : vector<2x128xf32>
    %227 = vector.extract_strided_slice %226 {offsets = [0, 0], sizes = [2, 32], strides = [1, 1]} : vector<2x128xf32> to vector<2x32xf32>
    %228 = vector.extract_strided_slice %226 {offsets = [0, 32], sizes = [2, 32], strides = [1, 1]} : vector<2x128xf32> to vector<2x32xf32>
    %229 = vector.extract_strided_slice %226 {offsets = [0, 64], sizes = [2, 32], strides = [1, 1]} : vector<2x128xf32> to vector<2x32xf32>
    %230 = vector.extract_strided_slice %226 {offsets = [0, 96], sizes = [2, 32], strides = [1, 1]} : vector<2x128xf32> to vector<2x32xf32>
    %231 = arith.mulf %228, %190 : vector<2x32xf32>
    %232 = arith.mulf %227, %229 : vector<2x32xf32>
    %233 = arith.addf %231, %232 : vector<2x32xf32>
    %234 = math.tanh %233 : vector<2x32xf32>
    %235 = arith.mulf %230, %234 : vector<2x32xf32>
    %236 = arith.truncf %235 : vector<2x32xf32> to vector<2x32xbf16>
    %c8_59 = arith.constant 8 : index
    %c0_60 = arith.constant 0 : index
    %237 = vector.load %arg15[%c8_59, %c0_60] : memref<16x32xf32, #tpu.memory_space<vmem>>, vector<2x32xf32>
    tpu.vector_store %arg15[%c8_59, %c0_60], %235 {strides = array<i32>} : memref<16x32xf32, #tpu.memory_space<vmem>>, vector<2x32xf32>,
    %cst_61 = arith.constant dense<0.000000e+00> : vector<2x128xf32>
    %238 = tpu.matmul %236, %2, %cst_61 {dimension_numbers = #tpu.dot_dimension_numbers<[1], [0], [0], [1], [0, 0, 1, 1], [], []>} : vector<2x32xbf16>, vector<32x128xbf16>, vector<2x128xf32> -> vector<2x128xf32>
    %239 = vector.broadcast %3 : vector<1x128xf32> to vector<2x128xf32>
    %240 = arith.addf %238, %239 : vector<2x128xf32>
    %c10 = arith.constant 10 : index
    %c0_62 = arith.constant 0 : index
    %241 = vector.load %arg14[%c10, %c0_62] : memref<16x128xf32, #tpu.memory_space<vmem>>, vector<2x128xf32>
    %cst_63 = arith.constant dense<0.000000e+00> : vector<2x128xf32>
    %242 = tpu.matmul %217, %0, %cst_63 {dimension_numbers = #tpu.dot_dimension_numbers<[1], [0], [0], [1], [0, 0, 1, 1], [], []>} : vector<2x32xbf16>, vector<32x128xbf16>, vector<2x128xf32> -> vector<2x128xf32>
    %243 = arith.addf %241, %242 : vector<2x128xf32>
    %244 = vector.broadcast %4 : vector<1x128xf32> to vector<2x128xf32>
    %245 = arith.mulf %243, %244 : vector<2x128xf32>
    %246 = math.tanh %245 : vector<2x128xf32>
    %247 = vector.broadcast %4 : vector<1x128xf32> to vector<2x128xf32>
    %248 = arith.mulf %246, %247 : vector<2x128xf32>
    %249 = vector.broadcast %5 : vector<1x128xf32> to vector<2x128xf32>
    %250 = arith.addf %248, %249 : vector<2x128xf32>
    %251 = vector.extract_strided_slice %250 {offsets = [0, 0], sizes = [2, 32], strides = [1, 1]} : vector<2x128xf32> to vector<2x32xf32>
    %252 = vector.extract_strided_slice %250 {offsets = [0, 32], sizes = [2, 32], strides = [1, 1]} : vector<2x128xf32> to vector<2x32xf32>
    %253 = vector.extract_strided_slice %250 {offsets = [0, 64], sizes = [2, 32], strides = [1, 1]} : vector<2x128xf32> to vector<2x32xf32>
    %254 = vector.extract_strided_slice %250 {offsets = [0, 96], sizes = [2, 32], strides = [1, 1]} : vector<2x128xf32> to vector<2x32xf32>
    %255 = arith.mulf %252, %214 : vector<2x32xf32>
    %256 = arith.mulf %251, %253 : vector<2x32xf32>
    %257 = arith.addf %255, %256 : vector<2x32xf32>
    %258 = math.tanh %257 : vector<2x32xf32>
    %259 = arith.mulf %254, %258 : vector<2x32xf32>
    %260 = arith.truncf %259 : vector<2x32xf32> to vector<2x32xbf16>
    %cst_64 = arith.constant dense<0.000000e+00> : vector<2x128xf32>
    %261 = tpu.matmul %260, %1, %cst_64 {dimension_numbers = #tpu.dot_dimension_numbers<[1], [0], [0], [1], [0, 0, 1, 1], [], []>} : vector<2x32xbf16>, vector<32x128xbf16>, vector<2x128xf32> -> vector<2x128xf32>
    %262 = arith.addf %240, %261 : vector<2x128xf32>
    %263 = vector.broadcast %4 : vector<1x128xf32> to vector<2x128xf32>
    %264 = arith.mulf %262, %263 : vector<2x128xf32>
    %265 = math.tanh %264 : vector<2x128xf32>
    %266 = vector.broadcast %4 : vector<1x128xf32> to vector<2x128xf32>
    %267 = arith.mulf %265, %266 : vector<2x128xf32>
    %268 = vector.broadcast %5 : vector<1x128xf32> to vector<2x128xf32>
    %269 = arith.addf %267, %268 : vector<2x128xf32>
    %270 = vector.extract_strided_slice %269 {offsets = [0, 0], sizes = [2, 32], strides = [1, 1]} : vector<2x128xf32> to vector<2x32xf32>
    %271 = vector.extract_strided_slice %269 {offsets = [0, 32], sizes = [2, 32], strides = [1, 1]} : vector<2x128xf32> to vector<2x32xf32>
    %272 = vector.extract_strided_slice %269 {offsets = [0, 64], sizes = [2, 32], strides = [1, 1]} : vector<2x128xf32> to vector<2x32xf32>
    %273 = vector.extract_strided_slice %269 {offsets = [0, 96], sizes = [2, 32], strides = [1, 1]} : vector<2x128xf32> to vector<2x32xf32>
    %274 = arith.mulf %271, %233 : vector<2x32xf32>
    %275 = arith.mulf %270, %272 : vector<2x32xf32>
    %276 = arith.addf %274, %275 : vector<2x32xf32>
    %277 = math.tanh %276 : vector<2x32xf32>
    %278 = arith.mulf %273, %277 : vector<2x32xf32>
    %279 = arith.truncf %278 : vector<2x32xf32> to vector<2x32xbf16>
    %c10_65 = arith.constant 10 : index
    %c0_66 = arith.constant 0 : index
    %280 = vector.load %arg15[%c10_65, %c0_66] : memref<16x32xf32, #tpu.memory_space<vmem>>, vector<2x32xf32>
    tpu.vector_store %arg15[%c10_65, %c0_66], %278 {strides = array<i32>} : memref<16x32xf32, #tpu.memory_space<vmem>>, vector<2x32xf32>,
    %cst_67 = arith.constant dense<0.000000e+00> : vector<2x128xf32>
    %281 = tpu.matmul %279, %2, %cst_67 {dimension_numbers = #tpu.dot_dimension_numbers<[1], [0], [0], [1], [0, 0, 1, 1], [], []>} : vector<2x32xbf16>, vector<32x128xbf16>, vector<2x128xf32> -> vector<2x128xf32>
    %282 = vector.broadcast %3 : vector<1x128xf32> to vector<2x128xf32>
    %283 = arith.addf %281, %282 : vector<2x128xf32>
    %c12 = arith.constant 12 : index
    %c0_68 = arith.constant 0 : index
    %284 = vector.load %arg14[%c12, %c0_68] : memref<16x128xf32, #tpu.memory_space<vmem>>, vector<2x128xf32>
    %cst_69 = arith.constant dense<0.000000e+00> : vector<2x128xf32>
    %285 = tpu.matmul %260, %0, %cst_69 {dimension_numbers = #tpu.dot_dimension_numbers<[1], [0], [0], [1], [0, 0, 1, 1], [], []>} : vector<2x32xbf16>, vector<32x128xbf16>, vector<2x128xf32> -> vector<2x128xf32>
    %286 = arith.addf %284, %285 : vector<2x128xf32>
    %287 = vector.broadcast %4 : vector<1x128xf32> to vector<2x128xf32>
    %288 = arith.mulf %286, %287 : vector<2x128xf32>
    %289 = math.tanh %288 : vector<2x128xf32>
    %290 = vector.broadcast %4 : vector<1x128xf32> to vector<2x128xf32>
    %291 = arith.mulf %289, %290 : vector<2x128xf32>
    %292 = vector.broadcast %5 : vector<1x128xf32> to vector<2x128xf32>
    %293 = arith.addf %291, %292 : vector<2x128xf32>
    %294 = vector.extract_strided_slice %293 {offsets = [0, 0], sizes = [2, 32], strides = [1, 1]} : vector<2x128xf32> to vector<2x32xf32>
    %295 = vector.extract_strided_slice %293 {offsets = [0, 32], sizes = [2, 32], strides = [1, 1]} : vector<2x128xf32> to vector<2x32xf32>
    %296 = vector.extract_strided_slice %293 {offsets = [0, 64], sizes = [2, 32], strides = [1, 1]} : vector<2x128xf32> to vector<2x32xf32>
    %297 = vector.extract_strided_slice %293 {offsets = [0, 96], sizes = [2, 32], strides = [1, 1]} : vector<2x128xf32> to vector<2x32xf32>
    %298 = arith.mulf %295, %257 : vector<2x32xf32>
    %299 = arith.mulf %294, %296 : vector<2x32xf32>
    %300 = arith.addf %298, %299 : vector<2x32xf32>
    %301 = math.tanh %300 : vector<2x32xf32>
    %302 = arith.mulf %297, %301 : vector<2x32xf32>
    %303 = arith.truncf %302 : vector<2x32xf32> to vector<2x32xbf16>
    %cst_70 = arith.constant dense<0.000000e+00> : vector<2x128xf32>
    %304 = tpu.matmul %303, %1, %cst_70 {dimension_numbers = #tpu.dot_dimension_numbers<[1], [0], [0], [1], [0, 0, 1, 1], [], []>} : vector<2x32xbf16>, vector<32x128xbf16>, vector<2x128xf32> -> vector<2x128xf32>
    %305 = arith.addf %283, %304 : vector<2x128xf32>
    %306 = vector.broadcast %4 : vector<1x128xf32> to vector<2x128xf32>
    %307 = arith.mulf %305, %306 : vector<2x128xf32>
    %308 = math.tanh %307 : vector<2x128xf32>
    %309 = vector.broadcast %4 : vector<1x128xf32> to vector<2x128xf32>
    %310 = arith.mulf %308, %309 : vector<2x128xf32>
    %311 = vector.broadcast %5 : vector<1x128xf32> to vector<2x128xf32>
    %312 = arith.addf %310, %311 : vector<2x128xf32>
    %313 = vector.extract_strided_slice %312 {offsets = [0, 0], sizes = [2, 32], strides = [1, 1]} : vector<2x128xf32> to vector<2x32xf32>
    %314 = vector.extract_strided_slice %312 {offsets = [0, 32], sizes = [2, 32], strides = [1, 1]} : vector<2x128xf32> to vector<2x32xf32>
    %315 = vector.extract_strided_slice %312 {offsets = [0, 64], sizes = [2, 32], strides = [1, 1]} : vector<2x128xf32> to vector<2x32xf32>
    %316 = vector.extract_strided_slice %312 {offsets = [0, 96], sizes = [2, 32], strides = [1, 1]} : vector<2x128xf32> to vector<2x32xf32>
    %317 = arith.mulf %314, %276 : vector<2x32xf32>
    %318 = arith.mulf %313, %315 : vector<2x32xf32>
    %319 = arith.addf %317, %318 : vector<2x32xf32>
    %320 = math.tanh %319 : vector<2x32xf32>
    %321 = arith.mulf %316, %320 : vector<2x32xf32>
    %322 = arith.truncf %321 : vector<2x32xf32> to vector<2x32xbf16>
    %c12_71 = arith.constant 12 : index
    %c0_72 = arith.constant 0 : index
    %323 = vector.load %arg15[%c12_71, %c0_72] : memref<16x32xf32, #tpu.memory_space<vmem>>, vector<2x32xf32>
    tpu.vector_store %arg15[%c12_71, %c0_72], %321 {strides = array<i32>} : memref<16x32xf32, #tpu.memory_space<vmem>>, vector<2x32xf32>,
    %cst_73 = arith.constant dense<0.000000e+00> : vector<2x128xf32>
    %324 = tpu.matmul %322, %2, %cst_73 {dimension_numbers = #tpu.dot_dimension_numbers<[1], [0], [0], [1], [0, 0, 1, 1], [], []>} : vector<2x32xbf16>, vector<32x128xbf16>, vector<2x128xf32> -> vector<2x128xf32>
    %325 = vector.broadcast %3 : vector<1x128xf32> to vector<2x128xf32>
    %326 = arith.addf %324, %325 : vector<2x128xf32>
    %c14 = arith.constant 14 : index
    %c0_74 = arith.constant 0 : index
    %327 = vector.load %arg14[%c14, %c0_74] : memref<16x128xf32, #tpu.memory_space<vmem>>, vector<2x128xf32>
    %cst_75 = arith.constant dense<0.000000e+00> : vector<2x128xf32>
    %328 = tpu.matmul %303, %0, %cst_75 {dimension_numbers = #tpu.dot_dimension_numbers<[1], [0], [0], [1], [0, 0, 1, 1], [], []>} : vector<2x32xbf16>, vector<32x128xbf16>, vector<2x128xf32> -> vector<2x128xf32>
    %329 = arith.addf %327, %328 : vector<2x128xf32>
    %330 = vector.broadcast %4 : vector<1x128xf32> to vector<2x128xf32>
    %331 = arith.mulf %329, %330 : vector<2x128xf32>
    %332 = math.tanh %331 : vector<2x128xf32>
    %333 = vector.broadcast %4 : vector<1x128xf32> to vector<2x128xf32>
    %334 = arith.mulf %332, %333 : vector<2x128xf32>
    %335 = vector.broadcast %5 : vector<1x128xf32> to vector<2x128xf32>
    %336 = arith.addf %334, %335 : vector<2x128xf32>
    %337 = vector.extract_strided_slice %336 {offsets = [0, 0], sizes = [2, 32], strides = [1, 1]} : vector<2x128xf32> to vector<2x32xf32>
    %338 = vector.extract_strided_slice %336 {offsets = [0, 32], sizes = [2, 32], strides = [1, 1]} : vector<2x128xf32> to vector<2x32xf32>
    %339 = vector.extract_strided_slice %336 {offsets = [0, 64], sizes = [2, 32], strides = [1, 1]} : vector<2x128xf32> to vector<2x32xf32>
    %340 = vector.extract_strided_slice %336 {offsets = [0, 96], sizes = [2, 32], strides = [1, 1]} : vector<2x128xf32> to vector<2x32xf32>
    %341 = arith.mulf %338, %300 : vector<2x32xf32>
    %342 = arith.mulf %337, %339 : vector<2x32xf32>
    %343 = arith.addf %341, %342 : vector<2x32xf32>
    %344 = math.tanh %343 : vector<2x32xf32>
    %345 = arith.mulf %340, %344 : vector<2x32xf32>
    %346 = arith.truncf %345 : vector<2x32xf32> to vector<2x32xbf16>
    %cst_76 = arith.constant dense<0.000000e+00> : vector<2x128xf32>
    %347 = tpu.matmul %346, %1, %cst_76 {dimension_numbers = #tpu.dot_dimension_numbers<[1], [0], [0], [1], [0, 0, 1, 1], [], []>} : vector<2x32xbf16>, vector<32x128xbf16>, vector<2x128xf32> -> vector<2x128xf32>
    %348 = arith.addf %326, %347 : vector<2x128xf32>
    %349 = vector.broadcast %4 : vector<1x128xf32> to vector<2x128xf32>
    %350 = arith.mulf %348, %349 : vector<2x128xf32>
    %351 = math.tanh %350 : vector<2x128xf32>
    %352 = vector.broadcast %4 : vector<1x128xf32> to vector<2x128xf32>
    %353 = arith.mulf %351, %352 : vector<2x128xf32>
    %354 = vector.broadcast %5 : vector<1x128xf32> to vector<2x128xf32>
    %355 = arith.addf %353, %354 : vector<2x128xf32>
    %356 = vector.extract_strided_slice %355 {offsets = [0, 0], sizes = [2, 32], strides = [1, 1]} : vector<2x128xf32> to vector<2x32xf32>
    %357 = vector.extract_strided_slice %355 {offsets = [0, 32], sizes = [2, 32], strides = [1, 1]} : vector<2x128xf32> to vector<2x32xf32>
    %358 = vector.extract_strided_slice %355 {offsets = [0, 64], sizes = [2, 32], strides = [1, 1]} : vector<2x128xf32> to vector<2x32xf32>
    %359 = vector.extract_strided_slice %355 {offsets = [0, 96], sizes = [2, 32], strides = [1, 1]} : vector<2x128xf32> to vector<2x32xf32>
    %360 = arith.mulf %357, %319 : vector<2x32xf32>
    %361 = arith.mulf %356, %358 : vector<2x32xf32>
    %362 = arith.addf %360, %361 : vector<2x32xf32>
    %363 = math.tanh %362 : vector<2x32xf32>
    %364 = arith.mulf %359, %363 : vector<2x32xf32>
    %c14_77 = arith.constant 14 : index
    %c0_78 = arith.constant 0 : index
    %365 = vector.load %arg15[%c14_77, %c0_78] : memref<16x32xf32, #tpu.memory_space<vmem>>, vector<2x32xf32>
    tpu.vector_store %arg15[%c14_77, %c0_78], %364 {strides = array<i32>} : memref<16x32xf32, #tpu.memory_space<vmem>>, vector<2x32xf32>,
    %c0_79 = arith.constant 0 : index
    %c0_80 = arith.constant 0 : index
    %366 = vector.load %arg15[%c0_79, %c0_80] : memref<16x32xf32, #tpu.memory_space<vmem>>, vector<16x32xf32>
    %c0_81 = arith.constant 0 : index
    %c0_82 = arith.constant 0 : index
    %367 = vector.load %arg9[%c0_81, %c0_82] : memref<32x128xf32, #tpu.memory_space<vmem>>, vector<32x128xf32>
    %cst_83 = arith.constant dense<0.000000e+00> : vector<16x128xf32>
    %368 = tpu.matmul %366, %367, %cst_83 {dimension_numbers = #tpu.dot_dimension_numbers<[1], [0], [0], [1], [0, 0, 1, 1], [], []>} : vector<16x32xf32>, vector<32x128xf32>, vector<16x128xf32> -> vector<16x128xf32>
    %c0_84 = arith.constant 0 : index
    %c0_85 = arith.constant 0 : index
    %369 = vector.load %arg10[%c0_84, %c0_85] : memref<1x128xf32, #tpu.memory_space<vmem>>, vector<1x128xf32>
    %370 = vector.broadcast %369 : vector<1x128xf32> to vector<16x128xf32>
    %371 = arith.addf %368, %370 : vector<16x128xf32>
    %c0_86 = arith.constant 0 : index
    %c0_87 = arith.constant 0 : index
    %372 = vector.load %arg13[%c0_86, %c0_87] : memref<16x128xf32, #tpu.memory_space<vmem>>, vector<16x128xf32>
    tpu.vector_store %arg13[%c0_86, %c0_87], %371 {strides = array<i32>} : memref<16x128xf32, #tpu.memory_space<vmem>>, vector<16x128xf32>,
    return
  }
}

</mosaic_0001>

<bundles_post_ra>
// kernel: tpu_custom_call.1
= control target key start
LH: loop header
LB: loop body
LE: loop exit
PB: predicated region body
PF: predicated region fallthrough
CT: control target
= control target key end

     0   :  { %18 = vsyncpa [#allocation5], 0  ;;  %s3148_s0 = inlined_call_operand.vmem [shape: f32[16,2], index: 0, kind: input, shape index: {}]   ;;  %s3149_s1 = inlined_call_operand.vmem [shape: f32[2,2,32], index: 1, kind: input, shape index: {}]   ;;  %s3150_s2 = inlined_call_operand.hbm [shape: f32[2,2,32], index: 2, kind: input, shape index: {}]   ;;  %s3151_s3 = inlined_call_operand.hbm [shape: f32[2,128], index: 3, kind: input, shape index: {}]   ;;  %s3152_s4 = inlined_call_operand.hbm [shape: f32[1,128], index: 4, kind: input, shape index: {}]   ;;  %s3153_s5 = inlined_call_operand.vmem [shape: bf16[32,128], index: 5, kind: input, shape index: {}]   ;;  %s3154_s6 = inlined_call_operand.hbm [shape: bf16[32,128], index: 6, kind: input, shape index: {}]   ;;  %s3155_s7 = inlined_call_operand.hbm [shape: bf16[32,128], index: 7, kind: input, shape index: {}]   ;;  %s3156_s8 = inlined_call_operand.hbm [shape: f32[1,128], index: 8, kind: input, shape index: {}]   ;;  %s3157_s9 = inlined_call_operand.vmem [shape: f32[32,128], index: 9, kind: input, shape index: {}]   ;;  %s3158_s10 = inlined_call_operand.vmem [shape: f32[1,128], index: 10, kind: input, shape index: {}]   ;;  %s3159_s11 = inlined_call_operand.vmem [shape: f32[1,128], index: 11, kind: input, shape index: {}]   ;;  %s3160_s12 = inlined_call_operand.vmem [shape: f32[1,128], index: 12, kind: input, shape index: {}]   ;;  %s3161_s13 = inlined_call_operand.hbm [shape: f32[16,128], index: 13, kind: output, shape index: {}]  }
   0x1   :  { %19 = vsyncpa [#allocation8], 0 }
   0x2   :  { %20 = vsyncpa [#allocation11], 0 }
   0x3   :  { %21 = vsyncpa [#allocation14], 0 }
   0x4   :  { %22 = vsyncpa [#allocation6], 0  ;;  %s2523_s25 = smov [#allocation7]   ;;  %s2524_s27 = smov [#allocation10]  }
   0x5   :  { %s45_s26 = sshll.u32 %s2523_s25, 4  ;;  %s66_s28 = sshll.u32 %s2524_s27, 4  ;;  %s46_s26 = int_to_ptr.vmem [resolvable:$true] %s45_s26  ;;  %s2608_s28 = int_to_ptr.vmem [resolvable:$true] %s66_s28 }
   0x6   :  { %s2359_s14 = scalar_lea.hbm %s3151_s3, 32 }
   0x7   :  { %p2360_p0 = scmp.ne.s32.totalorder %s3151_s3, %s2359_s14  ;;  %p2363_p1 = scmp.lt.u32.totalorder %s2359_s14, %s3151_s3 }
   0x9   :  { %p2365_p2 = pnand %p2363_p1, %p2360_p0 }
   0xb   :  { %2368 = shalt.err (!%p2365_p2)
}
   0xc   :  { %s2369_s19 = scalar_lea.vmem %s46_s26, 32  ;;  %p2374_p4 = scmp.lt.s32.totalorder %s46_s26, %s46_s26 }
   0xd   :  { %p2370_p3 = scmp.ne.s32.totalorder %s46_s26, %s2369_s19  ;;  %p2375_p5 = scmp.lt.s32.totalorder %s2369_s19, %s2369_s19 }
   0xf   :  { %p2376_p6 = por %p2375_p5, %p2374_p4 }
  0x11   :  { %p2377_p7 = pnand %p2376_p6, %p2370_p3 }
  0x13   :  { %2380 = shalt.err (!%p2377_p7)
}
  0x14   :  { %48 = dma.hbm_to_vmem [thread:$0]  %s3151_s3, 32, %s46_s26, [#allocation8]  }
  0x15   :  { %s2381_s24 = scalar_lea.hbm %s3154_s6, 256 }
  0x16   :  { %p2382_p8 = scmp.ne.s32.totalorder %s3154_s6, %s2381_s24  ;;  %p2385_p9 = scmp.lt.u32.totalorder %s2381_s24, %s3154_s6 }
  0x18   :  { %p2387_p10 = pnand %p2385_p9, %p2382_p8 }
  0x1a   :  { %2390 = shalt.err (!%p2387_p10)
}
  0x1b   :  { %s2391_s14 = scalar_lea.vmem %s2608_s28, 256  ;;  %p2396_p12 = scmp.lt.s32.totalorder %s2608_s28, %s2608_s28 }
  0x1c   :  { %p2392_p11 = scmp.ne.s32.totalorder %s2608_s28, %s2391_s14  ;;  %p2397_p13 = scmp.lt.s32.totalorder %s2391_s14, %s2391_s14 }
  0x1e   :  { %p2398_p0 = por %p2397_p13, %p2396_p12 }
  0x20   :  { %p2399_p1 = pnand %p2398_p0, %p2392_p11 }
  0x22   :  { %2402 = shalt.err (!%p2399_p1)
}
  0x23   :  { %s2525_s3 = smov 64   ;;  %s2526_s26 = smov 4  }
  0x24   :  { %72 = dma.hbm_to_vmem [thread:$0]  %s3154_s6, 256, %s2608_s28, [#allocation11], %s2525_s3, %s2525_s3, %s2526_s26  }
  0x25   :  { %s2527_s17 = smov [#allocation4]   ;;  %s2403_s21 = scalar_lea.hbm %s3150_s2, 64 }
  0x26   :  { %s32_s18 = sshll.u32 %s2527_s17, 4  ;;  %p2404_p2 = scmp.ne.s32.totalorder %s3150_s2, %s2403_s21  ;;  %s33_s18 = int_to_ptr.vmem [resolvable:$true] %s32_s18 }
  0x27   :  { %p2407_p3 = scmp.lt.u32.totalorder %s2403_s21, %s3150_s2 }
  0x29   :  { %p2409_p4 = pnand %p2407_p3, %p2404_p2 }
  0x2b   :  { %2412 = shalt.err (!%p2409_p4)
}
  0x2c   :  { %s2413_s27 = scalar_lea.vmem %s33_s18, 64  ;;  %p2418_p6 = scmp.lt.s32.totalorder %s33_s18, %s33_s18 }
  0x2d   :  { %p2414_p5 = scmp.ne.s32.totalorder %s33_s18, %s2413_s27  ;;  %p2419_p7 = scmp.lt.s32.totalorder %s2413_s27, %s2413_s27 }
  0x2f   :  { %p2420_p8 = por %p2419_p7, %p2418_p6 }
  0x31   :  { %p2421_p9 = pnand %p2420_p8, %p2414_p5 }
  0x33   :  { %2424 = shalt.err (!%p2421_p9)
}
  0x34   :  { %s2528_s6 = smov 32   ;;  %s2529_s28 = smov 2  }
  0x35   :  { %38 = dma.hbm_to_vmem [thread:$0]  %s3150_s2, 64, %s33_s18, [#allocation5], %s2528_s6, %s2528_s6, %s2529_s28  }
  0x36   :  { %s2530_s14 = smov [#allocation9]   ;;  %s2531_s16 = smov [#allocation12]  }
  0x37   :  { %s55_s15 = sshll.u32 %s2530_s14, 4  ;;  %s78_s17 = sshll.u32 %s2531_s16, 4  ;;  %s56_s15 = int_to_ptr.vmem [resolvable:$true] %s55_s15  ;;  %s79_s17 = int_to_ptr.vmem [resolvable:$true] %s78_s17 }
  0x38   :  { %s2425_s21 = scalar_lea.hbm %s3152_s4, 16 }
  0x39   :  { %p2426_p10 = scmp.ne.s32.totalorder %s3152_s4, %s2425_s21  ;;  %p2429_p11 = scmp.lt.u32.totalorder %s2425_s21, %s3152_s4 }
  0x3b   :  { %p2431_p12 = pnand %p2429_p11, %p2426_p10 }
  0x3d   :  { %2434 = shalt.err (!%p2431_p12)
}
  0x3e   :  { %s2435_s2 = scalar_lea.vmem %s56_s15, 16  ;;  %s2439_s18 = scalar_lea.vmem %s56_s15, 32 }
  0x3f   :  { %p2436_p13 = scmp.ne.s32.totalorder %s56_s15, %s2435_s2  ;;  %p2440_p0 = scmp.lt.s32.totalorder %s56_s15, %s56_s15 }
  0x40   :  { %p2441_p1 = scmp.lt.s32.totalorder %s2439_s18, %s2435_s2 }
  0x42   :  { %p2442_p2 = por %p2441_p1, %p2440_p0 }
  0x44   :  { %p2443_p3 = pnand %p2442_p2, %p2436_p13 }
  0x46   :  { %2446 = shalt.err (!%p2443_p3)
}
  0x47   :  { %58 = dma.hbm_to_vmem [thread:$0]  %s3152_s4, 16, %s56_s15, [#allocation8]  }
  0x48   :  { %s2447_s14 = scalar_lea.hbm %s3155_s7, 256 }
  0x49   :  { %p2448_p4 = scmp.ne.s32.totalorder %s3155_s7, %s2447_s14  ;;  %p2451_p5 = scmp.lt.u32.totalorder %s2447_s14, %s3155_s7 }
  0x4b   :  { %p2453_p6 = pnand %p2451_p5, %p2448_p4 }
  0x4d   :  { %2456 = shalt.err (!%p2453_p6)
}
  0x4e   :  { %s2457_s22 = scalar_lea.vmem %s79_s17, 256  ;;  %p2462_p8 = scmp.lt.s32.totalorder %s79_s17, %s79_s17 }
  0x4f   :  { %p2458_p7 = scmp.ne.s32.totalorder %s79_s17, %s2457_s22  ;;  %p2463_p9 = scmp.lt.s32.totalorder %s2457_s22, %s2457_s22 }
  0x51   :  { %p2464_p10 = por %p2463_p9, %p2462_p8 }
  0x53   :  { %p2465_p11 = pnand %p2464_p10, %p2458_p7 }
  0x55   :  { %2468 = shalt.err (!%p2465_p11)
}
  0x56   :  { %84 = dma.hbm_to_vmem [thread:$0]  %s3155_s7, 256, %s79_s17, [#allocation11], %s2525_s3, %s2525_s3, %s2526_s26  }
  0x57   :  { %s2532_s23 = smov [#allocation13]   ;;  %s2469_s18 = scalar_lea.hbm %s3156_s8, 16 }
  0x58   :  { %s91_s24 = sshll.u32 %s2532_s23, 4  ;;  %p2470_p12 = scmp.ne.s32.totalorder %s3156_s8, %s2469_s18  ;;  %s92_s24 = int_to_ptr.vmem [resolvable:$true] %s91_s24 }
  0x59   :  { %p2473_p13 = scmp.lt.u32.totalorder %s2469_s18, %s3156_s8 }
  0x5b   :  { %p2475_p0 = pnand %p2473_p13, %p2470_p12 }
  0x5d   :  { %2478 = shalt.err (!%p2475_p0)
}
  0x5e   :  { %s2479_s14 = scalar_lea.vmem %s92_s24, 16  ;;  %s2483_s7 = scalar_lea.vmem %s92_s24, 32 }
  0x5f   :  { %p2480_p1 = scmp.ne.s32.totalorder %s92_s24, %s2479_s14  ;;  %p2484_p2 = scmp.lt.s32.totalorder %s92_s24, %s92_s24 }
  0x60   :  { %p2485_p3 = scmp.lt.s32.totalorder %s2483_s7, %s2479_s14 }
  0x62   :  { %p2486_p4 = por %p2485_p3, %p2484_p2 }
  0x64   :  { %p2487_p5 = pnand %p2486_p4, %p2480_p1 }
  0x66   :  { %2490 = shalt.err (!%p2487_p5)
}
  0x67   :  { %94 = dma.hbm_to_vmem [thread:$0]  %s3156_s8, 16, %s92_s24, [#allocation14]  }
  0x68   :  { %2513 = dma.done.wait [#allocation5], 64  }
  0x69   :  { %2514 = vsyncadd [#allocation5], 4294967232 }
  0x6a   :  { %2515 = dma.done.wait [#allocation8], 48  }
  0x6b   :  { %2516 = vsyncadd [#allocation8], 4294967248 }
  0x6c   :  { %2517 = dma.done.wait [#allocation11], 512  }
  0x6d   :  { %2518 = vsyncadd [#allocation11], 4294966784 }
  0x6e   :  { %2519 = dma.done.wait [#allocation14], 16  }
  0x6f   :  { %2520 = vsyncadd [#allocation14], 4294967280  ;;  %v2533_v0 = vmov 0.0   ;;  %vm2534_vm0 = vmmov 0   ;;  %vm154_vm1 = vcmask 1041408   ;;  %vm147_vm2 = vcmask 15360  }
  0x70   :  { %2021 = vmatprep.subr.bf16.mxu1 %v2533_v0  ;;  %2025 = vmatprep.mubr.msk.bf16.mxu1 %vm2534_vm0, %v2533_v0  ;;  %v139_v1 = vld [vmem:[#allocation7] sm:$0x3]  ;;  %v137_v2 = vld [vmem:[%s3148_s0] sm:$0xff]  ;;  %v138_v3 = vld [vmem:[%s3148_s0 + $0x8] sm:$0xff]  ;;  %vm261_vm3 = vcmask 261120   ;;  %vm489_vm4 = vcmask 254976  }
  0x71   :  { %2016 = vmatprep.subr.msk.mxu0 %vm154_vm1, %v139_v1  ;;  %2018 = vmatprep.mubr.msk.f32.mxu0 %vm147_vm2, %v137_v2  ;;  %v2707_v4 = vld [vmem:[%s3153_s5] sm:$0xff]   ;;  %v2712_v5 = vld [vmem:[%s3153_s5 + $0x8] sm:$0xff]   ;;  %v1894_v8 = vld [vmem:[#allocation9] ss:$0 sm:$0xff]  ;;  %s2535_s8 = smov [#allocation15]  }
  0x72   :  { %2017 = vmatpush3.msk.msra.mxu0 %vm154_vm1, %v139_v1  ;;  %v235_v6 = vld [vmem:[%s3149_s1] sm:$0x3]  ;;  %v236_v25 = vld [vmem:[#allocation4] sm:$0x3]  ;;  %v2746_v32 = vld [vmem:[#allocation12] sm:$0xff]   ;;  %s1879_s19 = sshll.u32 %s2535_s8, 4  ;;  %s1880_s19 = int_to_ptr.vmem [resolvable:$true] %s1879_s19 }
  0x73   :  { %2019 = vmatmul.mubr.msk.f32.vlgmr.msra.gmra.mrb[0].mxu0 %vm147_vm2, %v138_v3  ;;  %2029 = vmatprep.subr.bf16.mxu0 %v2533_v0  ;;  %v241_v7 = vpack.c.bf16 %v235_v6, %v235_v6  ;;  %v2730_v16 = vld [vmem:[%s3159_s11] ss:$0 sm:$0xff]  ;;  %v2749_v33 = vld [vmem:[#allocation12 + $0x8] sm:$0xff]   ;;  %v1898_v34 = vld [vmem:[%s3149_s1 + $0x2] sm:$0x3]  ;;  %s2491_s20 = scalar_lea.vmem %s1880_s19, 256  ;;  %p2496_p7 = scmp.lt.s32.totalorder %s1880_s19, %s1880_s19 }
  0x74   :  { %2030 = vmatpush3.bf16.msra.mxu0 %v2707_v4  ;;  %2033 = vmatprep.mubr.msk.bf16.mxu0 %vm2534_vm0, %v2533_v0  ;;  %v2736_v22 = vld [vmem:[%s3160_s12] ss:$0 sm:$0xff]  ;;  %v242_v35 = vpack.c.bf16 %v1898_v34, %v1898_v34  ;;  %v2758_v36 = vld [vmem:[#allocation10] sm:$0xff]   ;;  %v240_v60 = vld [vmem:[#allocation4 + $0x2] sm:$0x3]  ;;  %p2492_p6 = scmp.ne.s32.totalorder %s1880_s19, %s2491_s20  ;;  %p2497_p8 = scmp.lt.s32.totalorder %s2491_s20, %s2491_s20 }
  0x75   :  { %2031 = vmatprep.subr.bf16.mxu0 %v2533_v0  ;;  %2022 = vmatpush3.bf16.msra.mxu1 %v2746_v32  ;;  %v2766_v38 = vld [vmem:[#allocation10 + $0x8] sm:$0xff]   ;;  %v2788_v43 = vld [vmem:[#allocation13] ss:$0 sm:$0xff] }
  0x76   :  { %2023 = vmatprep.subr.bf16.mxu1 %v2533_v0  ;;  %p2498_p9 = por %p2497_p8, %p2496_p7 }
  0x78   :  { %2032 = vmatpush3.bf16.msra.mxu0 %v2712_v5  ;;  %p2499_p10 = pnand %p2498_p9, %p2492_p6 }
  0x79   :  { %2045 = vmatprep.subr.bf16.mxu0 %v2533_v0  ;;  %2024 = vmatpush3.bf16.msra.mxu1 %v2749_v33 }
  0x7a   :  { %2037 = vmatprep.subr.bf16.mxu1 %v2533_v0 }
  0x7b   :  { %2034 = vmatmul.mubr.msk.bf16.vlgmr.msra.gmra.mrb[4].mxu0 %vm261_vm3, %v241_v7 }
  0x7c   :  { %2049 = vmatprep.mubr.msk.bf16.mxu0 %vm2534_vm0, %v2533_v0  ;;  %2046 = vmatpush3.bf16.msra.mxu0 %v2746_v32 }
  0x7d   :  { %2047 = vmatprep.subr.bf16.mxu0 %v2533_v0  ;;  %2026 = vmatmul.mubr.msk.bf16.vlgmr.msra.gmra.mrb[0].mxu1 %vm261_vm3, %v242_v35 }
  0x7e   :  { %2038 = vmatpush3.bf16.msra.mxu1 %v2758_v36  ;;  %2041 = vmatprep.mubr.msk.bf16.mxu1 %vm2534_vm0, %v2533_v0 }
  0x7f   :  { %2039 = vmatprep.subr.bf16.mxu1 %v2533_v0 }
  0x80   :  { %2048 = vmatpush3.bf16.msra.mxu0 %v2749_v33 }
  0x81   :  { %2061 = vmatprep.subr.bf16.mxu0 %v2533_v0 }
  0x82   :  { %2040 = vmatpush3.bf16.msra.mxu1 %v2766_v38 }
  0x83   :  { %2053 = vmatprep.subr.bf16.mxu1 %v2533_v0 }
 0x146   :  { %v2020_v9 = vpop.f32.mrb[0].mxu0 }
 0x147   :  { %v230_v10 = vadd.f32 %v2020_v9, %v1894_v8  ;;  %v224_v11 = vpop.f32.mrb[1].mxu0 }
 0x148   :  { %v225_v12 = vadd.f32 %v1894_v8, %v224_v11 }
 0x149   :  { %234 = vst [vmem:[#allocation2 + $0x8] sm:$0xff] %v230_v10 }
 0x14a   :  { %233 = vst [vmem:[#allocation2] sm:$0xff] %v225_v12 }
 0x14e   :  { %v355_v13 = vpop.f32.mrb[4].mxu0 }
 0x14f   :  { %v2035_v14 = vpop.f32.mrb[5].mxu0 }
 0x150   :  { %v358_v15 = vpop.f32.mrb[6].mxu0 }
 0x151   :  { %v305_v17 = vld [vmem:[#allocation2] sm:$0x3]  ;;  %v2036_v18 = vpop.f32.mrb[7].mxu0  ;;  %v537_v50 = vld [vmem:[#allocation2 + $0x2] sm:$0x3] }
 0x152   :  { %v361_v19 = vadd.f32 %v355_v13, %v305_v17  ;;  %v721_v34 = vld [vmem:[#allocation2 + $0x4] sm:$0x3] }
 0x154   :  { %v368_v20 = vmul.f32 %v2730_v16, %v361_v19 }
 0x156   :  { %2293 = vtanh.f32 %v368_v20 }
 0x160   :  { %v2294_v21 = vpop.eup %2293 }
 0x161   :  { %v370_v23 = vmul.f32 %v2294_v21, %v2730_v16 }
 0x163   :  { %v377_v24 = vadd.f32 %v2736_v22, %v370_v23 }
 0x165   :  { %384 = vrot.lane.b32.xlu0 %v377_v24, %s2525_s3 }
 0x169   :  { %379 = vrot.lane.b32.xlu0 %v236_v25, %s2528_s6 }
 0x1d7   :  { %v385_v26 = vpop.permute.xlu0 %384 }
 0x1d8   :  { %v387_v27 = vmul.f32 %v385_v26, %v377_v24 }
 0x1da   :  { %389 = vrot.lane.b32.xlu1 %v387_v27, %s2528_s6 }
 0x1db   :  { %v380_v28 = vpop.permute.xlu0 %379 }
 0x1dc   :  { %v382_v29 = vmul.f32 %v380_v28, %v377_v24 }
 0x24c   :  { %v390_v30 = vpop.permute.xlu1 %389 }
 0x24d   :  { %v2743_v31 = vadd.f32 %v390_v30, %v382_v29 }
 0x24f   :  { %2295 = vtanh.f32 %v2743_v31 }
 0x259   :  { %v2296_v37 = vpop.eup %2295 }
 0x25a   :  { %395 = vrot.lane.b32.xlu1 %v2296_v37, %s2525_s3 }
 0x2cc   :  { %v396_v39 = vpop.permute.xlu1 %395 }
 0x2cd   :  { %v398_v40 = vmul.f32 %v396_v39, %v377_v24 }
 0x2cf   :  { %v399_v41 = vpack.c.bf16 %v398_v40, %v398_v40 }
 0x2d1   :  { %401 = vrot.lane.b32.xlu0 %v399_v41, %s2528_s6 }
 0x343   :  { %v402_v42 = vpop.permute.xlu0 %401 }
 0x344   :  { %2042 = vmatmul.mubr.msk.bf16.vlgmr.msra.gmra.mrb[0].mxu1 %vm261_vm3, %v402_v42 }
 0x345   :  { %2054 = vmatpush3.bf16.msra.mxu1 %v2707_v4  ;;  %2057 = vmatprep.mubr.msk.bf16.mxu1 %vm2534_vm0, %v2533_v0 }
 0x346   :  { %2055 = vmatprep.subr.bf16.mxu1 %v2533_v0 }
 0x349   :  { %2056 = vmatpush3.bf16.msra.mxu1 %v2712_v5 }
 0x34a   :  { %2069 = vmatprep.subr.bf16.mxu1 %v2533_v0 }
 0x34c   :  { %2058 = vmatmul.mubr.msk.bf16.vlgmr.msra.gmra.mrb[4].mxu1 %vm261_vm3, %v402_v42 }
 0x34d   :  { %2070 = vmatpush3.bf16.msra.mxu1 %v2746_v32  ;;  %2073 = vmatprep.mubr.msk.bf16.mxu1 %vm2534_vm0, %v2533_v0 }
 0x34e   :  { %2071 = vmatprep.subr.bf16.mxu1 %v2533_v0 }
 0x351   :  { %2072 = vmatpush3.bf16.msra.mxu1 %v2749_v33 }
 0x352   :  { %2085 = vmatprep.subr.bf16.mxu1 %v2533_v0 }
 0x417   :  { %v452_v44 = vpop.f32.mrb[0].mxu1 }
 0x418   :  { %v2232_v45 = vadd.f32 %v2788_v43, %v452_v44  ;;  %v2043_v46 = vpop.f32.mrb[1].mxu1 }
 0x419   :  { %v455_v47 = vpop.f32.mrb[2].mxu1 }
 0x41a   :  { %v459_v48 = vmul.f32 %v2232_v45, %v2730_v16  ;;  %v2044_v49 = vpop.f32.mrb[3].mxu1 }
 0x41c   :  { %2297 = vtanh.f32 %v459_v48 }
 0x41f   :  { %v572_v51 = vpop.f32.mrb[4].mxu1 }
 0x420   :  { %v578_v52 = vadd.f32 %v572_v51, %v537_v50  ;;  %v2059_v53 = vpop.f32.mrb[5].mxu1 }
 0x421   :  { %v575_v54 = vpop.f32.mrb[6].mxu1 }
 0x422   :  { %v579_v55 = vmul.f32 %v2730_v16, %v578_v52  ;;  %v2060_v56 = vpop.f32.mrb[7].mxu1 }
 0x424   :  { %2299 = vtanh.f32 %v579_v55 }
 0x426   :  { %v2298_v57 = vpop.eup %2297 }
 0x427   :  { %v461_v58 = vmul.f32 %v2298_v57, %v2730_v16 }
 0x429   :  { %v462_v59 = vadd.f32 %v2736_v22, %v461_v58 }
 0x42b   :  { %469 = vrot.lane.b32.xlu1 %v462_v59, %s2525_s3 }
 0x42e   :  { %v2300_v61 = vpop.eup %2299 }
 0x42f   :  { %464 = vrot.lane.b32.xlu1 %v240_v60, %s2528_s6  ;;  %v581_v62 = vmul.f32 %v2300_v61, %v2730_v16 }
 0x431   :  { %v582_v63 = vadd.f32 %v2736_v22, %v581_v62 }
 0x433   :  { %585 = vrot.lane.b32.xlu0 %v582_v63, %s2525_s3  ;;  %v583_v11 = vmul.f32 %v582_v63, %v2743_v31 }
 0x49d   :  { %v470_v1 = vpop.permute.xlu1 %469 }
 0x49e   :  { %v472_v2 = vmul.f32 %v470_v1, %v462_v59 }
 0x4a0   :  { %474 = vrot.lane.b32.xlu0 %v472_v2, %s2528_s6 }
 0x4a1   :  { %v465_v7 = vpop.permute.xlu1 %464 }
 0x4a2   :  { %v467_v8 = vmul.f32 %v465_v7, %v462_v59 }
 0x4a5   :  { %v586_v3 = vpop.permute.xlu0 %585 }
 0x4a6   :  { %v588_v6 = vmul.f32 %v586_v3, %v582_v63 }
 0x4a8   :  { %590 = vrot.lane.b32.xlu1 %v588_v6, %s2528_s6 }
 0x512   :  { %v475_v9 = vpop.permute.xlu0 %474 }
 0x513   :  { %v2802_v10 = vadd.f32 %v475_v9, %v467_v8 }
 0x515   :  { %2301 = vtanh.f32 %v2802_v10 }
 0x51a   :  { %v591_v12 = vpop.permute.xlu1 %590 }
 0x51b   :  { %v2806_v13 = vadd.f32 %v591_v12, %v583_v11 }
 0x51d   :  { %2303 = vtanh.f32 %v2806_v13 }
 0x51f   :  { %v2302_v14 = vpop.eup %2301 }
 0x520   :  { %480 = vrot.lane.b32.xlu0 %v2302_v14, %s2525_s3 }
 0x527   :  { %v2304_v15 = vpop.eup %2303 }
 0x528   :  { %596 = vrot.lane.b32.xlu1 %v2304_v15, %s2525_s3  ;;  %v905_v15 = vld [vmem:[#allocation2 + $0x6] sm:$0x3] }
 0x592   :  { %v481_v17 = vpop.permute.xlu0 %480 }
 0x593   :  { %v2811_v18 = vmul.f32 %v481_v17, %v462_v59 }
 0x595   :  { %v484_v19 = vpack.c.bf16 %v2811_v18, %v2811_v18 }
 0x597   :  { %492 = vrot.lane.b32.xlu0 %v484_v19, %s2528_s6 }
 0x59a   :  { %v597_v20 = vpop.permute.xlu1 %596 }
 0x59b   :  { %v599_v21 = vmul.f32 %v597_v20, %v582_v63 }
 0x59d   :  { %v600_v23 = vpack.c.bf16 %v599_v21, %v599_v21 }
 0x59f   :  { %602 = vrot.lane.b32.xlu1 %v600_v23, %s2528_s6 }
 0x609   :  { %v493_v24 = vpop.permute.xlu0 %492 }
 0x60a   :  { %2050 = vmatmul.mubr.msk.bf16.vlgmr.msra.gmra.mrb[8].mxu0 %vm261_vm3, %v493_v24 }
 0x60b   :  { %2062 = vmatpush3.bf16.msra.mxu0 %v2758_v36  ;;  %2065 = vmatprep.mubr.msk.bf16.mxu0 %vm2534_vm0, %v2533_v0 }
 0x60c   :  { %2063 = vmatprep.subr.bf16.mxu0 %v2533_v0 }
 0x60f   :  { %2064 = vmatpush3.bf16.msra.mxu0 %v2766_v38 }
 0x610   :  { %2077 = vmatprep.subr.bf16.mxu0 %v2533_v0 }
 0x611   :  { %v603_v25 = vpop.permute.xlu1 %602 }
 0x616   :  { %2066 = vmatmul.mubr.msk.bf16.vlgmr.msra.gmra.mrb[8].mxu0 %vm261_vm3, %v603_v25 }
 0x617   :  { %2078 = vmatpush3.bf16.msra.mxu0 %v2707_v4  ;;  %2081 = vmatprep.mubr.msk.bf16.mxu0 %vm2534_vm0, %v2533_v0 }
 0x618   :  { %2079 = vmatprep.subr.bf16.mxu0 %v2533_v0 }
 0x61b   :  { %2080 = vmatpush3.bf16.msra.mxu0 %v2712_v5 }
 0x61c   :  { %2093 = vmatprep.subr.bf16.mxu0 %v2533_v0 }
 0x61e   :  { %2082 = vmatmul.mubr.msk.bf16.vlgmr.msra.gmra.mrb[12].mxu0 %vm261_vm3, %v603_v25 }
 0x61f   :  { %2094 = vmatpush3.bf16.msra.mxu0 %v2746_v32  ;;  %2097 = vmatprep.mubr.msk.bf16.mxu0 %vm2534_vm0, %v2533_v0 }
 0x620   :  { %2095 = vmatprep.subr.bf16.mxu0 %v2533_v0 }
 0x623   :  { %2096 = vmatpush3.bf16.msra.mxu0 %v2749_v33 }
 0x624   :  { %2109 = vmatprep.subr.bf16.mxu0 %v2533_v0 }
 0x6e9   :  { %v641_v26 = vpop.f32.mrb[8].mxu0 }
 0x6ea   :  { %v2233_v27 = vadd.f32 %v2788_v43, %v641_v26  ;;  %v2067_v28 = vpop.f32.mrb[9].mxu0 }
 0x6eb   :  { %v644_v29 = vpop.f32.mrb[10].mxu0 }
 0x6ec   :  { %v648_v30 = vmul.f32 %v2233_v27, %v2730_v16  ;;  %v2068_v31 = vpop.f32.mrb[11].mxu0 }
 0x6ee   :  { %2305 = vtanh.f32 %v648_v30 }
 0x6f1   :  { %v756_v35 = vpop.f32.mrb[12].mxu0 }
 0x6f2   :  { %v762_v37 = vadd.f32 %v756_v35, %v721_v34  ;;  %v2083_v39 = vpop.f32.mrb[13].mxu0 }
 0x6f3   :  { %v759_v40 = vpop.f32.mrb[14].mxu0 }
 0x6f4   :  { %v763_v41 = vmul.f32 %v2730_v16, %v762_v37  ;;  %v2084_v42 = vpop.f32.mrb[15].mxu0 }
 0x6f6   :  { %2307 = vtanh.f32 %v763_v41 }
 0x6f8   :  { %v2306_v44 = vpop.eup %2305 }
 0x6f9   :  { %v650_v45 = vmul.f32 %v2306_v44, %v2730_v16 }
 0x6fb   :  { %v651_v46 = vadd.f32 %v2736_v22, %v650_v45 }
 0x6fd   :  { %654 = vrot.lane.b32.xlu0 %v651_v46, %s2525_s3  ;;  %v652_v54 = vmul.f32 %v651_v46, %v2802_v10 }
 0x700   :  { %v2308_v47 = vpop.eup %2307 }
 0x701   :  { %v765_v48 = vmul.f32 %v2308_v47, %v2730_v16 }
 0x703   :  { %v766_v49 = vadd.f32 %v2736_v22, %v765_v48 }
 0x705   :  { %769 = vrot.lane.b32.xlu1 %v766_v49, %s2525_s3  ;;  %v767_v57 = vmul.f32 %v766_v49, %v2806_v13 }
 0x76f   :  { %v655_v50 = vpop.permute.xlu0 %654 }
 0x770   :  { %v657_v51 = vmul.f32 %v655_v50, %v651_v46 }
 0x772   :  { %659 = vrot.lane.b32.xlu0 %v657_v51, %s2528_s6 }
 0x777   :  { %v770_v52 = vpop.permute.xlu1 %769 }
 0x778   :  { %v772_v53 = vmul.f32 %v770_v52, %v766_v49 }
 0x77a   :  { %774 = vrot.lane.b32.xlu1 %v772_v53, %s2528_s6 }
 0x7e4   :  { %v660_v55 = vpop.permute.xlu0 %659 }
 0x7e5   :  { %v2850_v56 = vadd.f32 %v660_v55, %v652_v54 }
 0x7e7   :  { %2309 = vtanh.f32 %v2850_v56 }
 0x7ec   :  { %v775_v58 = vpop.permute.xlu1 %774 }
 0x7ed   :  { %v2854_v59 = vadd.f32 %v775_v58, %v767_v57 }
 0x7ef   :  { %2311 = vtanh.f32 %v2854_v59 }
 0x7f1   :  { %v2310_v60 = vpop.eup %2309 }
 0x7f2   :  { %665 = vrot.lane.b32.xlu0 %v2310_v60, %s2525_s3 }
 0x7f9   :  { %v2312_v61 = vpop.eup %2311 }
 0x7fa   :  { %780 = vrot.lane.b32.xlu1 %v2312_v61, %s2525_s3 }
 0x864   :  { %v666_v62 = vpop.permute.xlu0 %665 }
 0x865   :  { %v2859_v63 = vmul.f32 %v666_v62, %v651_v46  ;;  %v1089_v62 = vld [vmem:[#allocation2 + $0x8] sm:$0x3] }
 0x867   :  { %v669_v1 = vpack.c.bf16 %v2859_v63, %v2859_v63 }
 0x869   :  { %676 = vrot.lane.b32.xlu0 %v669_v1, %s2528_s6 }
 0x86c   :  { %v781_v2 = vpop.permute.xlu1 %780 }
 0x86d   :  { %v783_v3 = vmul.f32 %v781_v2, %v766_v49 }
 0x86f   :  { %v784_v6 = vpack.c.bf16 %v783_v3, %v783_v3 }
 0x871   :  { %786 = vrot.lane.b32.xlu1 %v784_v6, %s2528_s6 }
 0x8db   :  { %v677_v7 = vpop.permute.xlu0 %676 }
 0x8dc   :  { %2074 = vmatmul.mubr.msk.bf16.vlgmr.msra.gmra.mrb[8].mxu1 %vm261_vm3, %v677_v7 }
 0x8dd   :  { %2086 = vmatpush3.bf16.msra.mxu1 %v2758_v36  ;;  %2089 = vmatprep.mubr.msk.bf16.mxu1 %vm2534_vm0, %v2533_v0 }
 0x8de   :  { %2087 = vmatprep.subr.bf16.mxu1 %v2533_v0 }
 0x8e1   :  { %2088 = vmatpush3.bf16.msra.mxu1 %v2766_v38 }
 0x8e2   :  { %2101 = vmatprep.subr.bf16.mxu1 %v2533_v0 }
 0x8e3   :  { %v787_v8 = vpop.permute.xlu1 %786 }
 0x8e8   :  { %2090 = vmatmul.mubr.msk.bf16.vlgmr.msra.gmra.mrb[8].mxu1 %vm261_vm3, %v787_v8 }
 0x8e9   :  { %2102 = vmatpush3.bf16.msra.mxu1 %v2707_v4  ;;  %2105 = vmatprep.mubr.msk.bf16.mxu1 %vm2534_vm0, %v2533_v0 }
 0x8ea   :  { %2103 = vmatprep.subr.bf16.mxu1 %v2533_v0 }
 0x8ed   :  { %2104 = vmatpush3.bf16.msra.mxu1 %v2712_v5 }
 0x8ee   :  { %2117 = vmatprep.subr.bf16.mxu1 %v2533_v0 }
 0x8f0   :  { %2106 = vmatmul.mubr.msk.bf16.vlgmr.msra.gmra.mrb[12].mxu1 %vm261_vm3, %v787_v8 }
 0x8f1   :  { %2118 = vmatpush3.bf16.msra.mxu1 %v2746_v32  ;;  %2121 = vmatprep.mubr.msk.bf16.mxu1 %vm2534_vm0, %v2533_v0 }
 0x8f2   :  { %2119 = vmatprep.subr.bf16.mxu1 %v2533_v0 }
 0x8f5   :  { %2120 = vmatpush3.bf16.msra.mxu1 %v2749_v33 }
 0x8f6   :  { %2133 = vmatprep.subr.bf16.mxu1 %v2533_v0 }
 0x9bb   :  { %v825_v9 = vpop.f32.mrb[8].mxu1 }
 0x9bc   :  { %v2234_v10 = vadd.f32 %v2788_v43, %v825_v9  ;;  %v2091_v11 = vpop.f32.mrb[9].mxu1 }
 0x9bd   :  { %v828_v12 = vpop.f32.mrb[10].mxu1 }
 0x9be   :  { %v832_v13 = vmul.f32 %v2234_v10, %v2730_v16  ;;  %v2092_v14 = vpop.f32.mrb[11].mxu1 }
 0x9c0   :  { %2313 = vtanh.f32 %v832_v13 }
 0x9c3   :  { %v940_v17 = vpop.f32.mrb[12].mxu1 }
 0x9c4   :  { %v946_v19 = vadd.f32 %v940_v17, %v905_v15  ;;  %v2107_v20 = vpop.f32.mrb[13].mxu1 }
 0x9c5   :  { %v943_v21 = vpop.f32.mrb[14].mxu1 }
 0x9c6   :  { %v947_v23 = vmul.f32 %v2730_v16, %v946_v19  ;;  %v2108_v24 = vpop.f32.mrb[15].mxu1 }
 0x9c8   :  { %2315 = vtanh.f32 %v947_v23 }
 0x9ca   :  { %v2314_v25 = vpop.eup %2313 }
 0x9cb   :  { %v834_v26 = vmul.f32 %v2314_v25, %v2730_v16 }
 0x9cd   :  { %v835_v27 = vadd.f32 %v2736_v22, %v834_v26 }
 0x9cf   :  { %838 = vrot.lane.b32.xlu0 %v835_v27, %s2525_s3  ;;  %v836_v39 = vmul.f32 %v835_v27, %v2850_v56 }
 0x9d2   :  { %v2316_v28 = vpop.eup %2315 }
 0x9d3   :  { %v949_v29 = vmul.f32 %v2316_v28, %v2730_v16 }
 0x9d5   :  { %v950_v30 = vadd.f32 %v2736_v22, %v949_v29 }
 0x9d7   :  { %953 = vrot.lane.b32.xlu1 %v950_v30, %s2525_s3  ;;  %v951_v42 = vmul.f32 %v950_v30, %v2854_v59 }
 0xa41   :  { %v839_v31 = vpop.permute.xlu0 %838 }
 0xa42   :  { %v841_v34 = vmul.f32 %v839_v31, %v835_v27 }
 0xa44   :  { %843 = vrot.lane.b32.xlu0 %v841_v34, %s2528_s6 }
 0xa49   :  { %v954_v35 = vpop.permute.xlu1 %953 }
 0xa4a   :  { %v956_v37 = vmul.f32 %v954_v35, %v950_v30 }
 0xa4c   :  { %958 = vrot.lane.b32.xlu1 %v956_v37, %s2528_s6 }
 0xab6   :  { %v844_v40 = vpop.permute.xlu0 %843 }
 0xab7   :  { %v2898_v41 = vadd.f32 %v844_v40, %v836_v39 }
 0xab9   :  { %2317 = vtanh.f32 %v2898_v41 }
 0xabe   :  { %v959_v44 = vpop.permute.xlu1 %958 }
 0xabf   :  { %v2902_v45 = vadd.f32 %v959_v44, %v951_v42 }
 0xac1   :  { %2319 = vtanh.f32 %v2902_v45 }
 0xac3   :  { %v2318_v46 = vpop.eup %2317 }
 0xac4   :  { %849 = vrot.lane.b32.xlu0 %v2318_v46, %s2525_s3 }
 0xacb   :  { %v2320_v47 = vpop.eup %2319 }
 0xacc   :  { %964 = vrot.lane.b32.xlu1 %v2320_v47, %s2525_s3 }
 0xb36   :  { %v850_v48 = vpop.permute.xlu0 %849 }
 0xb37   :  { %v2907_v49 = vmul.f32 %v850_v48, %v835_v27 }
 0xb39   :  { %v853_v50 = vpack.c.bf16 %v2907_v49, %v2907_v49 }
 0xb3b   :  { %860 = vrot.lane.b32.xlu0 %v853_v50, %s2528_s6  ;;  %v1273_v50 = vld [vmem:[#allocation2 + $0xa] sm:$0x3] }
 0xb3e   :  { %v965_v51 = vpop.permute.xlu1 %964 }
 0xb3f   :  { %v967_v52 = vmul.f32 %v965_v51, %v950_v30 }
 0xb41   :  { %v968_v53 = vpack.c.bf16 %v967_v52, %v967_v52 }
 0xb43   :  { %970 = vrot.lane.b32.xlu1 %v968_v53, %s2528_s6 }
 0xbad   :  { %v861_v54 = vpop.permute.xlu0 %860 }
 0xbae   :  { %2098 = vmatmul.mubr.msk.bf16.vlgmr.msra.gmra.mrb[16].mxu0 %vm261_vm3, %v861_v54 }
 0xbaf   :  { %2110 = vmatpush3.bf16.msra.mxu0 %v2758_v36  ;;  %2113 = vmatprep.mubr.msk.bf16.mxu0 %vm2534_vm0, %v2533_v0 }
 0xbb0   :  { %2111 = vmatprep.subr.bf16.mxu0 %v2533_v0 }
 0xbb3   :  { %2112 = vmatpush3.bf16.msra.mxu0 %v2766_v38 }
 0xbb4   :  { %2125 = vmatprep.subr.bf16.mxu0 %v2533_v0 }
 0xbb5   :  { %v971_v55 = vpop.permute.xlu1 %970 }
 0xbba   :  { %2114 = vmatmul.mubr.msk.bf16.vlgmr.msra.gmra.mrb[16].mxu0 %vm261_vm3, %v971_v55 }
 0xbbb   :  { %2126 = vmatpush3.bf16.msra.mxu0 %v2707_v4  ;;  %2129 = vmatprep.mubr.msk.bf16.mxu0 %vm2534_vm0, %v2533_v0 }
 0xbbc   :  { %2127 = vmatprep.subr.bf16.mxu0 %v2533_v0 }
 0xbbf   :  { %2128 = vmatpush3.bf16.msra.mxu0 %v2712_v5 }
 0xbc0   :  { %2141 = vmatprep.subr.bf16.mxu0 %v2533_v0 }
 0xbc2   :  { %2130 = vmatmul.mubr.msk.bf16.vlgmr.msra.gmra.mrb[20].mxu0 %vm261_vm3, %v971_v55 }
 0xbc3   :  { %2142 = vmatpush3.bf16.msra.mxu0 %v2746_v32  ;;  %2145 = vmatprep.mubr.msk.bf16.mxu0 %vm2534_vm0, %v2533_v0 }
 0xbc4   :  { %2143 = vmatprep.subr.bf16.mxu0 %v2533_v0 }
 0xbc7   :  { %2144 = vmatpush3.bf16.msra.mxu0 %v2749_v33 }
 0xbc8   :  { %2157 = vmatprep.subr.bf16.mxu0 %v2533_v0 }
 0xc8d   :  { %v1009_v56 = vpop.f32.mrb[16].mxu0 }
 0xc8e   :  { %v2235_v57 = vadd.f32 %v2788_v43, %v1009_v56  ;;  %v2115_v58 = vpop.f32.mrb[17].mxu0 }
 0xc8f   :  { %v1012_v59 = vpop.f32.mrb[18].mxu0 }
 0xc90   :  { %v1016_v60 = vmul.f32 %v2235_v57, %v2730_v16  ;;  %v2116_v61 = vpop.f32.mrb[19].mxu0 }
 0xc92   :  { %2321 = vtanh.f32 %v1016_v60 }
 0xc95   :  { %v1124_v1 = vpop.f32.mrb[20].mxu0 }
 0xc96   :  { %v1130_v2 = vadd.f32 %v1124_v1, %v1089_v62  ;;  %v2131_v3 = vpop.f32.mrb[21].mxu0 }
 0xc97   :  { %v1127_v6 = vpop.f32.mrb[22].mxu0 }
 0xc98   :  { %v1131_v7 = vmul.f32 %v2730_v16, %v1130_v2  ;;  %v2132_v8 = vpop.f32.mrb[23].mxu0 }
 0xc9a   :  { %2323 = vtanh.f32 %v1131_v7 }
 0xc9c   :  { %v2322_v9 = vpop.eup %2321 }
 0xc9d   :  { %v1018_v10 = vmul.f32 %v2322_v9, %v2730_v16 }
 0xc9f   :  { %v1019_v11 = vadd.f32 %v2736_v22, %v1018_v10 }
 0xca1   :  { %1022 = vrot.lane.b32.xlu0 %v1019_v11, %s2525_s3  ;;  %v1020_v21 = vmul.f32 %v1019_v11, %v2898_v41 }
 0xca4   :  { %v2324_v12 = vpop.eup %2323 }
 0xca5   :  { %v1133_v13 = vmul.f32 %v2324_v12, %v2730_v16 }
 0xca7   :  { %v1134_v14 = vadd.f32 %v2736_v22, %v1133_v13 }
 0xca9   :  { %1137 = vrot.lane.b32.xlu1 %v1134_v14, %s2525_s3  ;;  %v1135_v25 = vmul.f32 %v1134_v14, %v2902_v45 }
 0xd13   :  { %v1023_v15 = vpop.permute.xlu0 %1022 }
 0xd14   :  { %v1025_v17 = vmul.f32 %v1023_v15, %v1019_v11 }
 0xd16   :  { %1027 = vrot.lane.b32.xlu0 %v1025_v17, %s2528_s6 }
 0xd1b   :  { %v1138_v19 = vpop.permute.xlu1 %1137 }
 0xd1c   :  { %v1140_v20 = vmul.f32 %v1138_v19, %v1134_v14 }
 0xd1e   :  { %1142 = vrot.lane.b32.xlu1 %v1140_v20, %s2528_s6 }
 0xd88   :  { %v1028_v23 = vpop.permute.xlu0 %1027 }
 0xd89   :  { %v2946_v24 = vadd.f32 %v1028_v23, %v1020_v21 }
 0xd8b   :  { %2325 = vtanh.f32 %v2946_v24 }
 0xd90   :  { %v1143_v26 = vpop.permute.xlu1 %1142 }
 0xd91   :  { %v2950_v27 = vadd.f32 %v1143_v26, %v1135_v25 }
 0xd93   :  { %2327 = vtanh.f32 %v2950_v27 }
 0xd95   :  { %v2326_v28 = vpop.eup %2325 }
 0xd96   :  { %1033 = vrot.lane.b32.xlu0 %v2326_v28, %s2525_s3 }
 0xd9d   :  { %v2328_v29 = vpop.eup %2327 }
 0xd9e   :  { %1148 = vrot.lane.b32.xlu1 %v2328_v29, %s2525_s3 }
 0xe08   :  { %v1034_v30 = vpop.permute.xlu0 %1033 }
 0xe09   :  { %v2955_v31 = vmul.f32 %v1034_v30, %v1019_v11 }
 0xe0b   :  { %v1037_v34 = vpack.c.bf16 %v2955_v31, %v2955_v31 }
 0xe0d   :  { %1044 = vrot.lane.b32.xlu0 %v1037_v34, %s2528_s6 }
 0xe10   :  { %v1149_v35 = vpop.permute.xlu1 %1148 }
 0xe11   :  { %v1151_v37 = vmul.f32 %v1149_v35, %v1134_v14  ;;  %v1457_v35 = vld [vmem:[#allocation2 + $0xc] sm:$0x3] }
 0xe13   :  { %v1152_v39 = vpack.c.bf16 %v1151_v37, %v1151_v37 }
 0xe15   :  { %1154 = vrot.lane.b32.xlu1 %v1152_v39, %s2528_s6 }
 0xe7f   :  { %v1045_v40 = vpop.permute.xlu0 %1044 }
 0xe80   :  { %2122 = vmatmul.mubr.msk.bf16.vlgmr.msra.gmra.mrb[16].mxu1 %vm261_vm3, %v1045_v40 }
 0xe81   :  { %2134 = vmatpush3.bf16.msra.mxu1 %v2758_v36  ;;  %2137 = vmatprep.mubr.msk.bf16.mxu1 %vm2534_vm0, %v2533_v0 }
 0xe82   :  { %2135 = vmatprep.subr.bf16.mxu1 %v2533_v0 }
 0xe85   :  { %2136 = vmatpush3.bf16.msra.mxu1 %v2766_v38 }
 0xe86   :  { %2149 = vmatprep.subr.bf16.mxu1 %v2533_v0 }
 0xe87   :  { %v1155_v41 = vpop.permute.xlu1 %1154 }
 0xe8c   :  { %2138 = vmatmul.mubr.msk.bf16.vlgmr.msra.gmra.mrb[16].mxu1 %vm261_vm3, %v1155_v41 }
 0xe8d   :  { %2150 = vmatpush3.bf16.msra.mxu1 %v2707_v4  ;;  %2153 = vmatprep.mubr.msk.bf16.mxu1 %vm2534_vm0, %v2533_v0 }
 0xe8e   :  { %2151 = vmatprep.subr.bf16.mxu1 %v2533_v0 }
 0xe91   :  { %2152 = vmatpush3.bf16.msra.mxu1 %v2712_v5 }
 0xe92   :  { %2165 = vmatprep.subr.bf16.mxu1 %v2533_v0 }
 0xe94   :  { %2154 = vmatmul.mubr.msk.bf16.vlgmr.msra.gmra.mrb[20].mxu1 %vm261_vm3, %v1155_v41 }
 0xe95   :  { %2166 = vmatpush3.bf16.msra.mxu1 %v2746_v32  ;;  %2169 = vmatprep.mubr.msk.bf16.mxu1 %vm2534_vm0, %v2533_v0 }
 0xe96   :  { %2167 = vmatprep.subr.bf16.mxu1 %v2533_v0 }
 0xe99   :  { %2168 = vmatpush3.bf16.msra.mxu1 %v2749_v33 }
 0xe9a   :  { %2181 = vmatprep.subr.bf16.mxu1 %v2533_v0 }
 0xf5f   :  { %v1193_v42 = vpop.f32.mrb[16].mxu1 }
 0xf60   :  { %v2236_v44 = vadd.f32 %v2788_v43, %v1193_v42  ;;  %v2139_v45 = vpop.f32.mrb[17].mxu1 }
 0xf61   :  { %v1196_v46 = vpop.f32.mrb[18].mxu1 }
 0xf62   :  { %v1200_v47 = vmul.f32 %v2236_v44, %v2730_v16  ;;  %v2140_v48 = vpop.f32.mrb[19].mxu1 }
 0xf64   :  { %2329 = vtanh.f32 %v1200_v47 }
 0xf67   :  { %v1308_v51 = vpop.f32.mrb[20].mxu1 }
 0xf68   :  { %v1314_v52 = vadd.f32 %v1308_v51, %v1273_v50  ;;  %v2155_v53 = vpop.f32.mrb[21].mxu1 }
 0xf69   :  { %v1311_v54 = vpop.f32.mrb[22].mxu1 }
 0xf6a   :  { %v1315_v55 = vmul.f32 %v2730_v16, %v1314_v52  ;;  %v2156_v56 = vpop.f32.mrb[23].mxu1 }
 0xf6c   :  { %2331 = vtanh.f32 %v1315_v55 }
 0xf6e   :  { %v2330_v57 = vpop.eup %2329 }
 0xf6f   :  { %v1202_v58 = vmul.f32 %v2330_v57, %v2730_v16 }
 0xf71   :  { %v1203_v59 = vadd.f32 %v2736_v22, %v1202_v58 }
 0xf73   :  { %1206 = vrot.lane.b32.xlu0 %v1203_v59, %s2525_s3  ;;  %v1204_v7 = vmul.f32 %v1203_v59, %v2946_v24 }
 0xf76   :  { %v2332_v60 = vpop.eup %2331 }
 0xf77   :  { %v1317_v61 = vmul.f32 %v2332_v60, %v2730_v16 }
 0xf79   :  { %v1318_v62 = vadd.f32 %v2736_v22, %v1317_v61 }
 0xf7b   :  { %1321 = vrot.lane.b32.xlu1 %v1318_v62, %s2525_s3  ;;  %v1319_v10 = vmul.f32 %v1318_v62, %v2950_v27 }
 0xfe5   :  { %v1207_v1 = vpop.permute.xlu0 %1206 }
 0xfe6   :  { %v1209_v2 = vmul.f32 %v1207_v1, %v1203_v59 }
 0xfe8   :  { %1211 = vrot.lane.b32.xlu0 %v1209_v2, %s2528_s6 }
 0xfed   :  { %v1322_v3 = vpop.permute.xlu1 %1321 }
 0xfee   :  { %v1324_v6 = vmul.f32 %v1322_v3, %v1318_v62 }
 0xff0   :  { %1326 = vrot.lane.b32.xlu1 %v1324_v6, %s2528_s6 }
0x105a   :  { %v1212_v8 = vpop.permute.xlu0 %1211 }
0x105b   :  { %v2994_v9 = vadd.f32 %v1212_v8, %v1204_v7 }
0x105d   :  { %2333 = vtanh.f32 %v2994_v9 }
0x1062   :  { %v1327_v11 = vpop.permute.xlu1 %1326 }
0x1063   :  { %v2998_v12 = vadd.f32 %v1327_v11, %v1319_v10 }
0x1065   :  { %2335 = vtanh.f32 %v2998_v12 }
0x1067   :  { %v2334_v13 = vpop.eup %2333 }
0x1068   :  { %1217 = vrot.lane.b32.xlu0 %v2334_v13, %s2525_s3 }
0x106f   :  { %v2336_v14 = vpop.eup %2335 }
0x1070   :  { %1332 = vrot.lane.b32.xlu1 %v2336_v14, %s2525_s3 }
0x10da   :  { %v1218_v15 = vpop.permute.xlu0 %1217 }
0x10db   :  { %v3003_v17 = vmul.f32 %v1218_v15, %v1203_v59 }
0x10dd   :  { %v1221_v19 = vpack.c.bf16 %v3003_v17, %v3003_v17 }
0x10df   :  { %1228 = vrot.lane.b32.xlu0 %v1221_v19, %s2528_s6  ;;  %v1641_v19 = vld [vmem:[#allocation2 + $0xe] sm:$0x3] }
0x10e2   :  { %v1333_v20 = vpop.permute.xlu1 %1332 }
0x10e3   :  { %v1335_v21 = vmul.f32 %v1333_v20, %v1318_v62 }
0x10e5   :  { %v1336_v23 = vpack.c.bf16 %v1335_v21, %v1335_v21 }
0x10e7   :  { %1338 = vrot.lane.b32.xlu1 %v1336_v23, %s2528_s6 }
0x1151   :  { %v1229_v24 = vpop.permute.xlu0 %1228 }
0x1152   :  { %2146 = vmatmul.mubr.msk.bf16.vlgmr.msra.gmra.mrb[24].mxu0 %vm261_vm3, %v1229_v24 }
0x1153   :  { %2158 = vmatpush3.bf16.msra.mxu0 %v2758_v36  ;;  %2161 = vmatprep.mubr.msk.bf16.mxu0 %vm2534_vm0, %v2533_v0 }
0x1154   :  { %2159 = vmatprep.subr.bf16.mxu0 %v2533_v0 }
0x1157   :  { %2160 = vmatpush3.bf16.msra.mxu0 %v2766_v38 }
0x1158   :  { %2173 = vmatprep.subr.bf16.mxu0 %v2533_v0 }
0x1159   :  { %v1339_v25 = vpop.permute.xlu1 %1338 }
0x115e   :  { %2162 = vmatmul.mubr.msk.bf16.vlgmr.msra.gmra.mrb[24].mxu0 %vm261_vm3, %v1339_v25 }
0x115f   :  { %2174 = vmatpush3.bf16.msra.mxu0 %v2707_v4  ;;  %2177 = vmatprep.mubr.msk.bf16.mxu0 %vm2534_vm0, %v2533_v0 }
0x1160   :  { %2175 = vmatprep.subr.bf16.mxu0 %v2533_v0 }
0x1163   :  { %2176 = vmatpush3.bf16.msra.mxu0 %v2712_v5 }
0x1164   :  { %2189 = vmatprep.subr.bf16.mxu0 %v2533_v0 }
0x1166   :  { %2178 = vmatmul.mubr.msk.bf16.vlgmr.msra.gmra.mrb[28].mxu0 %vm261_vm3, %v1339_v25 }
0x1167   :  { %2190 = vmatpush3.bf16.msra.mxu0 %v2746_v32  ;;  %2193 = vmatprep.mubr.msk.bf16.mxu0 %vm2534_vm0, %v2533_v0 }
0x1168   :  { %2191 = vmatprep.subr.bf16.mxu0 %v2533_v0 }
0x116b   :  { %2192 = vmatpush3.bf16.msra.mxu0 %v2749_v33 }
0x116c   :  { %2205 = vmatprep.subr.bf16.mxu0 %v2533_v0 }
0x1231   :  { %v1377_v26 = vpop.f32.mrb[24].mxu0 }
0x1232   :  { %v2237_v27 = vadd.f32 %v2788_v43, %v1377_v26  ;;  %v2163_v28 = vpop.f32.mrb[25].mxu0 }
0x1233   :  { %v1380_v29 = vpop.f32.mrb[26].mxu0 }
0x1234   :  { %v1384_v30 = vmul.f32 %v2237_v27, %v2730_v16  ;;  %v2164_v34 = vpop.f32.mrb[27].mxu0 }
0x1236   :  { %2337 = vtanh.f32 %v1384_v30 }
0x1239   :  { %v1492_v32 = vpop.f32.mrb[28].mxu0 }
0x123a   :  { %v1498_v37 = vadd.f32 %v1492_v32, %v1457_v35  ;;  %v2179_v39 = vpop.f32.mrb[29].mxu0 }
0x123b   :  { %v1495_v40 = vpop.f32.mrb[30].mxu0 }
0x123c   :  { %v1499_v41 = vmul.f32 %v2730_v16, %v1498_v37  ;;  %v2180_v42 = vpop.f32.mrb[31].mxu0 }
0x123e   :  { %2339 = vtanh.f32 %v1499_v41 }
0x1240   :  { %v2338_v33 = vpop.eup %2337 }
0x1241   :  { %v1386_v44 = vmul.f32 %v2338_v33, %v2730_v16 }
0x1243   :  { %v1387_v45 = vadd.f32 %v2736_v22, %v1386_v44 }
0x1245   :  { %1390 = vrot.lane.b32.xlu0 %v1387_v45, %s2525_s3  ;;  %v1388_v54 = vmul.f32 %v1387_v45, %v2994_v9 }
0x1248   :  { %v2340_v46 = vpop.eup %2339 }
0x1249   :  { %v1501_v47 = vmul.f32 %v2340_v46, %v2730_v16 }
0x124b   :  { %v1502_v48 = vadd.f32 %v2736_v22, %v1501_v47 }
0x124d   :  { %1505 = vrot.lane.b32.xlu1 %v1502_v48, %s2525_s3  ;;  %v1503_v57 = vmul.f32 %v1502_v48, %v2998_v12 }
0x12b7   :  { %v1391_v50 = vpop.permute.xlu0 %1390 }
0x12b8   :  { %v1393_v51 = vmul.f32 %v1391_v50, %v1387_v45 }
0x12ba   :  { %1395 = vrot.lane.b32.xlu0 %v1393_v51, %s2528_s6 }
0x12bf   :  { %v1506_v52 = vpop.permute.xlu1 %1505 }
0x12c0   :  { %v1508_v53 = vmul.f32 %v1506_v52, %v1502_v48 }
0x12c2   :  { %1510 = vrot.lane.b32.xlu1 %v1508_v53, %s2528_s6 }
0x132c   :  { %v1396_v55 = vpop.permute.xlu0 %1395 }
0x132d   :  { %v1398_v56 = vadd.f32 %v1396_v55, %v1388_v54 }
0x132f   :  { %2341 = vtanh.f32 %v1398_v56 }
0x1334   :  { %v1511_v58 = vpop.permute.xlu1 %1510 }
0x1335   :  { %v1513_v59 = vadd.f32 %v1511_v58, %v1503_v57  ;;  %v2357_v58 = vld [vmem:[%s3159_s11] ss:$0 sm:$0xff] }
0x1337   :  { %2343 = vtanh.f32 %v1513_v59 }
0x1339   :  { %v2342_v60 = vpop.eup %2341 }
0x133a   :  { %1401 = vrot.lane.b32.xlu0 %v2342_v60, %s2525_s3 }
0x1341   :  { %v2344_v61 = vpop.eup %2343 }
0x1342   :  { %1516 = vrot.lane.b32.xlu1 %v2344_v61, %s2525_s3 }
0x13ac   :  { %v1402_v62 = vpop.permute.xlu0 %1401 }
0x13ad   :  { %v3045_v1 = vmul.f32 %v1402_v62, %v1387_v45 }
0x13af   :  { %v1405_v2 = vpack.c.bf16 %v3045_v1, %v3045_v1 }
0x13b1   :  { %1412 = vrot.lane.b32.xlu0 %v1405_v2, %s2528_s6 }
0x13b4   :  { %v1517_v3 = vpop.permute.xlu1 %1516 }
0x13b5   :  { %v1519_v6 = vmul.f32 %v1517_v3, %v1502_v48 }
0x13b7   :  { %v1520_v7 = vpack.c.bf16 %v1519_v6, %v1519_v6 }
0x13b9   :  { %1522 = vrot.lane.b32.xlu1 %v1520_v7, %s2528_s6 }
0x1423   :  { %v1413_v8 = vpop.permute.xlu0 %1412 }
0x1424   :  { %2170 = vmatmul.mubr.msk.bf16.vlgmr.msra.gmra.mrb[24].mxu1 %vm261_vm3, %v1413_v8 }
0x1425   :  { %2182 = vmatpush3.bf16.msra.mxu1 %v2758_v36  ;;  %2185 = vmatprep.mubr.msk.bf16.mxu1 %vm2534_vm0, %v2533_v0 }
0x1426   :  { %2183 = vmatprep.subr.bf16.mxu1 %v2533_v0 }
0x1429   :  { %2184 = vmatpush3.bf16.msra.mxu1 %v2766_v38 }
0x142a   :  { %2197 = vmatprep.subr.bf16.mxu1 %v2533_v0 }
0x142b   :  { %v1523_v9 = vpop.permute.xlu1 %1522 }
0x1430   :  { %2186 = vmatmul.mubr.msk.bf16.vlgmr.msra.gmra.mrb[24].mxu1 %vm261_vm3, %v1523_v9 }
0x1431   :  { %2198 = vmatpush3.bf16.msra.mxu1 %v2707_v4  ;;  %2201 = vmatprep.mubr.msk.bf16.mxu1 %vm2534_vm0, %v2533_v0 }
0x1432   :  { %2199 = vmatprep.subr.bf16.mxu1 %v2533_v0 }
0x1435   :  { %2200 = vmatpush3.bf16.msra.mxu1 %v2712_v5 }
0x1438   :  { %2202 = vmatmul.mubr.msk.bf16.vlgmr.msra.gmra.mrb[28].mxu1 %vm261_vm3, %v1523_v9 }
0x1503   :  { %v1561_v10 = vpop.f32.mrb[24].mxu1 }
0x1504   :  { %v2238_v11 = vadd.f32 %v2788_v43, %v1561_v10  ;;  %v2187_v12 = vpop.f32.mrb[25].mxu1  ;;  %v1781_v10 = vld [vmem:[%s3157_s9 + $0x8] sm:$0xff] }
0x1505   :  { %v1564_v13 = vpop.f32.mrb[26].mxu1  ;;  %v1782_v12 = vld [vmem:[%s3157_s9 + $0x10] sm:$0xff] }
0x1506   :  { %v1568_v14 = vmul.f32 %v2238_v11, %v2730_v16  ;;  %v2188_v15 = vpop.f32.mrb[27].mxu1  ;;  %v1783_v13 = vld [vmem:[%s3157_s9 + $0x18] sm:$0xff] }
0x1508   :  { %2345 = vtanh.f32 %v1568_v14  ;;  %v2228_v14 = vpack.c.bf16 %v1783_v13, %v1782_v12 }
0x150b   :  { %v1676_v4 = vpop.f32.mrb[28].mxu1 }
0x150c   :  { %v1682_v20 = vadd.f32 %v1676_v4, %v1641_v19  ;;  %v2203_v21 = vpop.f32.mrb[29].mxu1 }
0x150d   :  { %v1679_v23 = vpop.f32.mrb[30].mxu1 }
0x150e   :  { %v1683_v24 = vmul.f32 %v2730_v16, %v1682_v20  ;;  %v2204_v25 = vpop.f32.mrb[31].mxu1  ;;  %v1932_v23 = vld [vmem:[%s3158_s10] ss:$0 sm:$0xff] }
0x1510   :  { %2347 = vtanh.f32 %v1683_v24 }
0x1512   :  { %v2346_v5 = vpop.eup %2345 }
0x1513   :  { %v1570_v26 = vmul.f32 %v2346_v5, %v2730_v16 }
0x1515   :  { %v1571_v27 = vadd.f32 %v2736_v22, %v1570_v26 }
0x1517   :  { %1574 = vrot.lane.b32.xlu0 %v1571_v27, %s2525_s3  ;;  %v1572_v39 = vmul.f32 %v1571_v27, %v1398_v56 }
0x151a   :  { %v2348_v28 = vpop.eup %2347 }
0x151b   :  { %v1685_v29 = vmul.f32 %v2348_v28, %v2730_v16 }
0x151d   :  { %v1686_v30 = vadd.f32 %v2736_v22, %v1685_v29 }
0x151f   :  { %1689 = vrot.lane.b32.xlu1 %v1686_v30, %s2525_s3  ;;  %v1687_v42 = vmul.f32 %v1686_v30, %v1513_v59 }
0x1589   :  { %v1575_v34 = vpop.permute.xlu0 %1574 }
0x158a   :  { %v1577_v35 = vmul.f32 %v1575_v34, %v1571_v27 }
0x158c   :  { %1579 = vrot.lane.b32.xlu0 %v1577_v35, %s2528_s6 }
0x1591   :  { %v1690_v32 = vpop.permute.xlu1 %1689 }
0x1592   :  { %v1692_v37 = vmul.f32 %v1690_v32, %v1686_v30 }
0x1594   :  { %1694 = vrot.lane.b32.xlu1 %v1692_v37, %s2528_s6 }
0x15fe   :  { %v1580_v40 = vpop.permute.xlu0 %1579 }
0x15ff   :  { %v1582_v41 = vadd.f32 %v1580_v40, %v1572_v39 }
0x1601   :  { %2349 = vtanh.f32 %v1582_v41 }
0x1606   :  { %v1695_v33 = vpop.permute.xlu1 %1694 }
0x1607   :  { %v1697_v44 = vadd.f32 %v1695_v33, %v1687_v42 }
0x1609   :  { %2351 = vtanh.f32 %v1697_v44 }
0x160b   :  { %v2350_v16 = vpop.eup %2349 }
0x160c   :  { %1585 = vrot.lane.b32.xlu0 %v2350_v16, %s2525_s3 }
0x1613   :  { %v2352_v22 = vpop.eup %2351 }
0x1614   :  { %1700 = vrot.lane.b32.xlu1 %v2352_v22, %s2525_s3 }
0x167e   :  { %v1586_v45 = vpop.permute.xlu0 %1585 }
0x167f   :  { %v1588_v46 = vmul.f32 %v1586_v45, %v1571_v27 }
0x1681   :  { %v1589_v47 = vpack.c.bf16 %v1588_v46, %v1588_v46 }
0x1683   :  { %1596 = vrot.lane.b32.xlu0 %v1589_v47, %s2528_s6 }
0x1686   :  { %v1701_v48 = vpop.permute.xlu1 %1700 }
0x1687   :  { %v1703_v50 = vmul.f32 %v1701_v48, %v1686_v30 }
0x1689   :  { %v1704_v51 = vpack.c.bf16 %v1703_v50, %v1703_v50 }
0x168b   :  { %1706 = vrot.lane.b32.xlu1 %v1704_v51, %s2528_s6 }
0x16f5   :  { %v1597_v52 = vpop.permute.xlu0 %1596 }
0x16f6   :  { %2194 = vmatmul.mubr.msk.bf16.vlgmr.msra.gmra.mrb[32].mxu0 %vm261_vm3, %v1597_v52 }
0x16f7   :  { %2206 = vmatpush3.bf16.msra.mxu0 %v2758_v36  ;;  %2209 = vmatprep.mubr.msk.bf16.mxu0 %vm2534_vm0, %v2533_v0 }
0x16f8   :  { %2207 = vmatprep.subr.bf16.mxu0 %v2533_v0  ;;  %v2358_v0 = vld [vmem:[%s3160_s12] ss:$0 sm:$0xff] }
0x16fb   :  { %2208 = vmatpush3.bf16.msra.mxu0 %v2766_v38 }
0x16fd   :  { %v1707_v53 = vpop.permute.xlu1 %1706 }
0x1702   :  { %2210 = vmatmul.mubr.msk.bf16.vlgmr.msra.gmra.mrb[32].mxu0 %vm261_vm3, %v1707_v53 }
0x17d5   :  { %v1745_v54 = vpop.f32.mrb[32].mxu0 }
0x17d6   :  { %v2239_v55 = vadd.f32 %v2788_v43, %v1745_v54  ;;  %v2211_v56 = vpop.f32.mrb[33].mxu0 }
0x17d7   :  { %v1748_v57 = vpop.f32.mrb[34].mxu0 }
0x17d8   :  { %v1752_v36 = vmul.f32 %v2357_v58, %v2239_v55  ;;  %v2212_v59 = vpop.f32.mrb[35].mxu0 }
0x17da   :  { %2353 = vtanh.f32 %v1752_v36 }
0x17e4   :  { %v2354_v60 = vpop.eup %2353 }
0x17e5   :  { %v1754_v61 = vmul.f32 %v2357_v58, %v2354_v60 }
0x17e7   :  { %v1755_v38 = vadd.f32 %v2358_v0, %v1754_v61 }
0x17e9   :  { %1758 = vrot.lane.b32.xlu0 %v1755_v38, %s2525_s3  ;;  %v1756_v2 = vmul.f32 %v1755_v38, %v1582_v41 }
0x185b   :  { %v1759_v62 = vpop.permute.xlu0 %1758 }
0x185c   :  { %v1761_v43 = vmul.f32 %v1759_v62, %v1755_v38 }
0x185e   :  { %1763 = vrot.lane.b32.xlu1 %v1761_v43, %s2528_s6 }
0x1862   :  { %486 = vrot.lane.b32.xlu1 %v2811_v18, %s2528_s6 }
0x1866   :  { %855 = vrot.lane.b32.xlu1 %v2907_v49, %s2528_s6 }
0x186a   :  { %1223 = vrot.lane.b32.xlu1 %v3003_v17, %s2528_s6  ;;  %v1780_v17 = vld [vmem:[%s3157_s9] sm:$0xff] }
0x186b   :  { %v2224_v11 = vpack.c.bf16 %v1781_v10, %v1780_v17 }
0x186d   :  { %2225 = vmatprep.subr.bf16.mxu1 %v2224_v11 }
0x186e   :  { %1591 = vrot.lane.b32.xlu1 %v1588_v46, %s2528_s6  ;;  %2227 = vmatpush3.bf16.msra.mxu1 %v2224_v11 }
0x186f   :  { %2229 = vmatprep.subr.bf16.mxu1 %v2228_v14 }
0x1872   :  { %2231 = vmatpush3.bf16.msra.mxu1 %v2228_v14 }
0x18d0   :  { %v1764_v3 = vpop.permute.xlu1 %1763 }
0x18d1   :  { %v1766_v6 = vadd.f32 %v1764_v3, %v1756_v2 }
0x18d3   :  { %2355 = vtanh.f32 %v1766_v6 }
0x18d4   :  { %v487_v7 = vpop.permute.xlu1 %486 }
0x18d5   :  { %490 = vst.msk [vmem:[#allocation3] sm:$0x3] %vm489_vm4, %v487_v7 }
0x18d8   :  { %v856_v8 = vpop.permute.xlu1 %855 }
0x18d9   :  { %858 = vst.msk [vmem:[#allocation3 + $0x4] sm:$0x3] %vm489_vm4, %v856_v8 }
0x18dc   :  { %v1224_v18 = vpop.permute.xlu1 %1223 }
0x18dd   :  { %v2356_v9 = vpop.eup %2355  ;;  %1226 = vst.msk [vmem:[#allocation3 + $0x8] sm:$0x3] %vm489_vm4, %v1224_v18 }
0x18de   :  { %1769 = vrot.lane.b32.xlu0 %v2356_v9, %s2525_s3 }
0x18e0   :  { %v1592_v49 = vpop.permute.xlu1 %1591 }
0x18e1   :  { %1594 = vst.msk [vmem:[#allocation3 + $0xc] sm:$0x3] %vm489_vm4, %v1592_v49 }
0x18e2   :  { %671 = vrot.lane.b32.xlu0 %v2859_v63, %s2528_s6 }
0x18e6   :  { %1039 = vrot.lane.b32.xlu0 %v2955_v31, %s2528_s6 }
0x18ea   :  { %1407 = vrot.lane.b32.xlu0 %v3045_v1, %s2528_s6 }
0x1950   :  { %v1770_v63 = vpop.permute.xlu0 %1769 }
0x1951   :  { %v1772_v15 = vmul.f32 %v1770_v63, %v1755_v38 }
0x1953   :  { %1774 = vrot.lane.b32.xlu0 %v1772_v15, %s2528_s6 }
0x1954   :  { %v672_v19 = vpop.permute.xlu0 %671 }
0x1955   :  { %674 = vst.msk [vmem:[#allocation3 + $0x2] sm:$0x3] %vm489_vm4, %v672_v19 }
0x1958   :  { %v1040_v31 = vpop.permute.xlu0 %1039 }
0x1959   :  { %1042 = vst.msk [vmem:[#allocation3 + $0x6] sm:$0x3] %vm489_vm4, %v1040_v31 }
0x195c   :  { %v1408_v1 = vpop.permute.xlu0 %1407 }
0x195d   :  { %1410 = vst.msk [vmem:[#allocation3 + $0xa] sm:$0x3] %vm489_vm4, %v1408_v1 }
0x1960   :  { %v1778_v4 = vld [vmem:[#allocation3] sm:$0xff] }
0x1961   :  { %2221 = vmatprep.mubr.msk.f32.mxu1 %vm261_vm3, %v1778_v4 }
0x19c5   :  { %v1775_v20 = vpop.permute.xlu0 %1774 }
0x19c6   :  { %1777 = vst.msk [vmem:[#allocation3 + $0xe] sm:$0x3] %vm489_vm4, %v1775_v20 }
0x19cd   :  { %v1779_v21 = vld [vmem:[#allocation3 + $0x8] sm:$0xff] }
0x19ce   :  { %2222 = vmatmul.mubr.msk.f32.vlgmr.msra.gmra.mrb[32].mxu1 %vm261_vm3, %v1779_v21 }
0x1aa1   :  { %v2223_v24 = vpop.f32.mrb[32].mxu1 }
0x1aa2   :  { %v1869_v25 = vadd.f32 %v2223_v24, %v1932_v23  ;;  %v1863_v5 = vpop.f32.mrb[33].mxu1 }
0x1aa3   :  { %v1864_v26 = vadd.f32 %v1932_v23, %v1863_v5 }
0x1aa4   :  { %1873 = vst [vmem:[#allocation15 + $0x8] sm:$0xff] %v1869_v25 }
0x1aa5   :  { %1872 = vst [vmem:[#allocation15] sm:$0xff] %v1864_v26 }
0x1aa6   :  { %2502 = shalt.err (!%p2499_p10)
}
0x1aa7   :  { %s2503_s10 = scalar_lea.hbm %s3161_s13, 256 }
0x1aa8   :  { %p2504_p11 = scmp.ne.s32.totalorder %s3161_s13, %s2503_s10  ;;  %p2507_p12 = scmp.lt.u32.totalorder %s2503_s10, %s3161_s13 }
0x1aaa   :  { %p2509_p13 = pnand %p2507_p12, %p2504_p11 }
0x1aac   :  { %2512 = shalt.err (!%p2509_p13)
}
0x1aad   :  { %s2536_s0 = smov 128   ;;  %s2537_s5 = smov 8  }
0x1aae   :  { %1885 = dma.vmem_to_hbm [thread:$0]  %s1880_s19, 256, %s3161_s13, [#allocation6], %s2536_s0, %s2536_s0, %s2537_s5  }
0x1aaf   :  { %2521 = dma.done.wait [#allocation6], 256  }
0x1ab0   :  { %2522 = vsyncadd [#allocation6], 4294967040 }
0x1ab1   :  { %1889 = vsyncpa [#allocation5], 1 }
0x1ab2   :  { %1890 = vsyncpa [#allocation8], 1 }
0x1ab3   :  { %1891 = vsyncpa [#allocation11], 1 }
0x1ab4   :  { %1892 = vsyncpa [#allocation14], 1 }
0x1ab5   :  { %1893 = vsyncpa [#allocation6], 1 }

</bundles_post_ra>
